<compile_context>
chip_gen: v7x
topology: tpu7x:2x2x1
jax: 0.10.0
libtpu: 0.0.40
codegen_flags: <defaults>
</compile_context>

<pallas_src>
import math
import numpy as np

import jax
import jax.numpy as jnp
from jax import lax
from jax.experimental import pallas as pl
from jax.experimental.pallas import tpu as pltpu

# ---------------- synthetic module configuration (small) ----------------
NUM_BRANCHES = 2
NUM_BLOCKS = (1, 1)            # BasicBlock count per branch
NUM_INCHANNELS = (4, 8)        # == NUM_CHANNELS * expansion -> no downsample path
NUM_CHANNELS = (4, 8)
MULTI_SCALE_OUTPUT = True
BN_EPS = 1e-5

BATCH = 2
HEIGHTS = (16, 8)              # branch spatial sizes baked into the folded weights
WIDTHS = (16, 8)

LANE = 128                     # TPU lane width
ROW_W = tuple(WIDTHS[i] * NUM_INCHANNELS[i] for i in range(NUM_BRANCHES))   # (64, 64)
assert NUM_BRANCHES == 2 and MULTI_SCALE_OUTPUT
assert all(rw <= LANE for rw in ROW_W)
assert tuple(NUM_INCHANNELS) == tuple(NUM_CHANNELS)   # BasicBlock expansion == 1


def _cparams():
    return pltpu.CompilerParams(dimension_semantics=("parallel",))


def _bcast_spec(a):
    """Full-array block, same block every grid step (weights / biases / interp mats)."""
    nd = a.ndim
    return pl.BlockSpec(a.shape, lambda n, _nd=nd: (0,) * _nd)


def _batch_spec(shape):
    """Per-batch block: squeeze the leading N dim."""
    nd = len(shape)
    return pl.BlockSpec((None,) + tuple(shape[1:]),
                        lambda n, _nd=nd: (n,) + (0,) * (_nd - 1))


# ============================ Pallas kernels ============================
def branch_blocks_call(x0r, x1r, w0, b0, w1, b1):
    """Both branches' BasicBlock chains in one kernel.

    x{i}r : (N, H_i, 128) row-lane layout (lanes 0..W_i*C_i-1 real, rest zero)
    w{i}  : (num_blocks*6, 128, 128) folded conv matrices [T1 kh0..2, T2 kh0..2] per block
    b{i}  : (num_blocks*2, 128) bias rows [b1, b2] per block
    Returns (f0r, f1r) in the same row-lane layout.
    """
    N, H0, _ = x0r.shape
    H1 = x1r.shape[1]
    nb0, nb1 = NUM_BLOCKS

    def kernel(x0_ref, x1_ref, w0_ref, b0_ref, w1_ref, b1_ref, f0_ref, f1_ref):
        zrow = jnp.zeros((1, LANE), jnp.float32)

        def run_branch(x, w_ref, b_ref, nblk, H):
            h = x
            for blk in range(nblk):
                # conv1 (3x3, s=1) + BN + ReLU : 3 banded matmuls over H-shifted rows
                hp = jnp.concatenate([zrow, h, zrow], axis=0)            # (H+2, 128)
                a = jnp.dot(hp[0:H], w_ref[6 * blk + 0],
                            preferred_element_type=jnp.float32)
                a = a + jnp.dot(hp[1:H + 1], w_ref[6 * blk + 1],
                                preferred_element_type=jnp.float32)
                a = a + jnp.dot(hp[2:H + 2], w_ref[6 * blk + 2],
                                preferred_element_type=jnp.float32)
                y1 = jnp.maximum(a + b_ref[2 * blk:2 * blk + 1, :], 0.0)
                # conv2 (3x3, s=1) + BN + residual + ReLU
                yp = jnp.concatenate([zrow, y1, zrow], axis=0)
                a2 = jnp.dot(yp[0:H], w_ref[6 * blk + 3],
                             preferred_element_type=jnp.float32)
                a2 = a2 + jnp.dot(yp[1:H + 1], w_ref[6 * blk + 4],
                                  preferred_element_type=jnp.float32)
                a2 = a2 + jnp.dot(yp[2:H + 2], w_ref[6 * blk + 5],
                                  preferred_element_type=jnp.float32)
                h = jnp.maximum(a2 + b_ref[2 * blk + 1:2 * blk + 2, :] + h, 0.0)
            return h

        f0_ref[...] = run_branch(x0_ref[...], w0_ref, b0_ref, nb0, H0)
        f1_ref[...] = run_branch(x1_ref[...], w1_ref, b1_ref, nb1, H1)

    return pl.pallas_call(
        kernel,
        out_shape=(jax.ShapeDtypeStruct((N, H0, LANE), jnp.float32),
                   jax.ShapeDtypeStruct((N, H1, LANE), jnp.float32)),
        grid=(N,),
        in_specs=[_batch_spec(x0r.shape), _batch_spec(x1r.shape),
                  _bcast_spec(w0), _bcast_spec(b0),
                  _bcast_spec(w1), _bcast_spec(b1)],
        out_specs=(pl.BlockSpec((None, H0, LANE), lambda n: (n, 0, 0)),
                   pl.BlockSpec((None, H1, LANE), lambda n: (n, 0, 0))),
        compiler_params=_cparams(),
    )(x0r, x1r, w0, b0, w1, b1)


def fuse_call(f0r, f1r, f0e, f0o, Bup, bup, RH, T2, b2f):
    """Both HRNet fuse outputs in one kernel.

    out0 = ReLU(f0 + upsample(BN(conv1x1(f1))))    -- Bup folds conv1x1*scale*RW, then RH matmul
    out1 = ReLU(f1 + BN(conv3x3_s2(f0)))           -- 3 banded matmuls on even/odd row slabs
    Carry inputs f0r / f1r are aliased to the outputs.
    """
    N, H0, _ = f0r.shape
    H1 = f1r.shape[1]

    def kernel(f0_ref, f1_ref, e_ref, o_ref, bup_ref, bb_ref, rh_ref, t2_ref, b2_ref,
               o0_ref, o1_ref):
        f0 = f0_ref[...]                                   # (H0, 128)
        f1 = f1_ref[...]                                   # (H1, 128)

        # ---- output 0: f0 + bilinear-upsampled 1x1-conv+BN of f1 ----
        z = jnp.dot(f1, bup_ref[...], preferred_element_type=jnp.float32)   # (H1, 128)
        up = jnp.dot(rh_ref[...], z, preferred_element_type=jnp.float32)    # (H0, 128)
        o0_ref[...] = jnp.maximum(f0 + up + bb_ref[...], 0.0)

        # ---- output 1: f1 + stride-2 3x3 conv + BN of f0 ----
        fe = e_ref[...]                                    # rows 0,2,...,H0-2
        fo = o_ref[...]                                    # rows 1,3,...,H0-1
        zrow = jnp.zeros((1, LANE), jnp.float32)
        fo_m1 = jnp.concatenate([zrow, fo[0:H1 - 1]], axis=0)   # rows -1,1,...,H0-3
        a = jnp.dot(fo_m1, t2_ref[0], preferred_element_type=jnp.float32)
        a = a + jnp.dot(fe, t2_ref[1], preferred_element_type=jnp.float32)
        a = a + jnp.dot(fo, t2_ref[2], preferred_element_type=jnp.float32)
        o1_ref[...] = jnp.maximum(f1 + a + b2_ref[...], 0.0)

    return pl.pallas_call(
        kernel,
        out_shape=(jax.ShapeDtypeStruct((N, H0, LANE), jnp.float32),
                   jax.ShapeDtypeStruct((N, H1, LANE), jnp.float32)),
        grid=(N,),
        in_specs=[_batch_spec(f0r.shape), _batch_spec(f1r.shape),
                  _batch_spec(f0e.shape), _batch_spec(f0o.shape),
                  _bcast_spec(Bup), _bcast_spec(bup), _bcast_spec(RH),
                  _bcast_spec(T2), _bcast_spec(b2f)],
        out_specs=(pl.BlockSpec((None, H0, LANE), lambda n: (n, 0, 0)),
                   pl.BlockSpec((None, H1, LANE), lambda n: (n, 0, 0))),
        input_output_aliases={0: 0, 1: 1},
        compiler_params=_cparams(),
    )(f0r, f1r, f0e, f0o, Bup, bup, RH, T2, b2f)


# ============================ layout helpers (XLA side) ============================
def to_row(x):
    """(N, H, W, C) NHWC -> (N, H, 128) row-lane layout (lane = w*C + c, zero padded)."""
    N, H, W, C = x.shape
    r = x.reshape(N, H, W * C)
    return jnp.pad(r, ((0, 0), (0, 0), (0, LANE - W * C)))


def from_row(xr, W, C):
    N, H, _ = xr.shape
    return xr[..., :W * C].reshape(N, H, W, C)


# ============================ weight folding (one-time, host side) ============================
def interp_matrix(out_size, in_size):
    """1-D bilinear interpolation matrix, F.interpolate(..., align_corners=True)."""
    R = np.zeros((out_size, in_size), np.float32)
    if in_size == 1:
        R[:, 0] = 1.0
        return R
    if out_size == 1:
        R[0, 0] = 1.0
        return R
    scale = (in_size - 1) / (out_size - 1)
    for o in range(out_size):
        src = o * scale
        i0 = min(int(math.floor(src)), in_size - 1)
        i1 = min(i0 + 1, in_size - 1)
        w1 = src - i0
        R[o, i0] += 1.0 - w1
        R[o, i1] += w1
    return R


def interp_matrix_2d(hi, wi, hj, wj):
    return jnp.asarray(np.kron(interp_matrix(hi, hj), interp_matrix(wi, wj)))


def fold_conv3x3(w_hwio, scale, bias, Win, Wout, stride):
    """Fold a 3x3 conv (pad=1) + BN scale into 3 banded (128,128) matrices + bias row.

    T[kh][wi*Cin+ci, wo*Cout+co] = w[kh, wi - stride*wo + 1, ci, co] * scale[co]
    out_row[ho] = sum_kh x_row[stride*ho + kh - 1] @ T[kh]   (OOB rows are zero).
    """
    w = np.asarray(w_hwio, np.float32)          # (3, 3, Cin, Cout)
    s = np.asarray(scale, np.float32)
    b = np.asarray(bias, np.float32)
    Cin, Cout = w.shape[2], w.shape[3]
    assert Win * Cin <= LANE and Wout * Cout <= LANE
    T = np.zeros((3, LANE, LANE), np.float32)
    for kh in range(3):
        for wo in range(Wout):
            for kw in range(3):
                wi = wo * stride + kw - 1
                if 0 <= wi < Win:
                    T[kh, wi * Cin:(wi + 1) * Cin, wo * Cout:(wo + 1) * Cout] = \
                        w[kh, kw] * s[None, :]
    brow = np.zeros((1, LANE), np.float32)
    brow[0, :Wout * Cout] = np.tile(b, Wout)
    return jnp.asarray(T), jnp.asarray(brow)


def fold_upsample_1x1(w_1x1, scale, bias, Wj, Wi, RW):
    """Fold 1x1 conv + BN scale + W-axis bilinear interp into one (128,128) matrix.

    B[wj*Cj+cj, wi*Ci+ci] = RW[wi, wj] * w[cj, ci] * scale[ci].
    Bias passes through the (row-sum-1) interpolation unchanged -> plain bias row.
    """
    w = np.asarray(w_1x1, np.float32)[0, 0]     # (Cj, Ci)
    s = np.asarray(scale, np.float32)
    b = np.asarray(bias, np.float32)
    Cj, Ci = w.shape
    assert Wj * Cj <= LANE and Wi * Ci <= LANE
    ws = w * s[None, :]
    B = np.zeros((LANE, LANE), np.float32)
    for wj in range(Wj):
        for wi in range(Wi):
            B[wj * Cj:(wj + 1) * Cj, wi * Ci:(wi + 1) * Ci] = RW[wi, wj] * ws
    brow = np.zeros((1, LANE), np.float32)
    brow[0, :Wi * Ci] = np.tile(b, Wi)
    return jnp.asarray(B), jnp.asarray(brow)


# ---------------- parameter init (deterministic, synthetic) ----------------
def _conv_w(key, kh, kw, cin, cout):
    fan_in = kh * kw * cin
    return (jax.random.normal(key, (kh, kw, cin, cout), jnp.float32)
            / math.sqrt(fan_in))


def _bn(key, c):
    k1, k2, k3, k4 = jax.random.split(key, 4)
    gamma = 1.0 + 0.1 * jax.random.normal(k1, (c,), jnp.float32)
    beta = 0.1 * jax.random.normal(k2, (c,), jnp.float32)
    mean = 0.1 * jax.random.normal(k3, (c,), jnp.float32)
    var = 1.0 + 0.1 * jax.random.uniform(k4, (c,), jnp.float32)
    scale = gamma / jnp.sqrt(var + BN_EPS)
    bias = beta - mean * scale
    return scale, bias


def init_params(key):
    params = {"branches": [], "fuse": []}
    keys = jax.random.split(key, 64)
    ki = 0
    for i in range(NUM_BRANCHES):
        c = NUM_CHANNELS[i]
        blocks = []
        for _ in range(NUM_BLOCKS[i]):
            w1 = _conv_w(keys[ki], 3, 3, c, c); ki += 1
            s1, b1 = _bn(keys[ki], c); ki += 1
            w2 = _conv_w(keys[ki], 3, 3, c, c); ki += 1
            s2, b2 = _bn(keys[ki], c); ki += 1
            blocks.append(dict(w1=w1, s1=s1, b1=b1, w2=w2, s2=s2, b2=b2))
        params["branches"].append(blocks)

    n_out = NUM_BRANCHES if MULTI_SCALE_OUTPUT else 1
    for i in range(n_out):
        row = {}
        for j in range(NUM_BRANCHES):
            if j > i:
                w = _conv_w(keys[ki], 1, 1, NUM_INCHANNELS[j], NUM_INCHANNELS[i]); ki += 1
                s, b = _bn(keys[ki], NUM_INCHANNELS[i]); ki += 1
                row[j] = dict(w=w, s=s, b=b)
            elif j < i:
                chain = []
                for k in range(i - j):
                    cout = NUM_INCHANNELS[i] if k == i - j - 1 else NUM_INCHANNELS[j]
                    w = _conv_w(keys[ki], 3, 3, NUM_INCHANNELS[j], cout); ki += 1
                    s, b = _bn(keys[ki], cout); ki += 1
                    chain.append(dict(w=w, s=s, b=b))
                row[j] = chain
        params["fuse"].append(row)
    return params


def prepare_params(params):
    """Fold convs + BN into row-lane matmul operands, once, outside the hot path."""
    pp = {}
    for i in range(NUM_BRANCHES):
        Wd = WIDTHS[i]
        Tmats, brows = [], []
        for blk in params["branches"][i]:
            T1, r1 = fold_conv3x3(blk["w1"], blk["s1"], blk["b1"], Wd, Wd, stride=1)
            T2, r2 = fold_conv3x3(blk["w2"], blk["s2"], blk["b2"], Wd, Wd, stride=1)
            Tmats += [T1, T2]
            brows += [r1, r2]
        pp[f"w{i}"] = jnp.concatenate(Tmats, axis=0)        # (nb*6, 128, 128)
        pp[f"b{i}"] = jnp.concatenate(brows, axis=0)        # (nb*2, 128)

    # fuse output 0 <- branch 1 : 1x1 conv + BN + bilinear upsample
    e = params["fuse"][0][1]
    RW = interp_matrix(WIDTHS[0], WIDTHS[1])
    pp["Bup"], pp["bup"] = fold_upsample_1x1(e["w"], e["s"], e["b"],
                                             WIDTHS[1], WIDTHS[0], RW)
    pp["RH"] = jnp.asarray(interp_matrix(HEIGHTS[0], HEIGHTS[1]))    # (H0, H1)

    # fuse output 1 <- branch 0 : single stride-2 3x3 conv + BN
    # TODO(synk): generalize to i-j>1 downsample chains / >2 branches.
    e = params["fuse"][1][0][0]
    pp["T2"], pp["b2f"] = fold_conv3x3(e["w"], e["s"], e["b"],
                                       WIDTHS[0], WIDTHS[1], stride=2)
    return pp


# ---------------- forward (2 Pallas calls) ----------------
def hr_module_forward(x0r, x1r, pp):
    f0r, f1r = branch_blocks_call(x0r, x1r, pp["w0"], pp["b0"], pp["w1"], pp["b1"])
    # even/odd row slabs of branch-0 features for the stride-2 fuse conv (cheap XLA slices)
    f0e = f0r[:, 0::2, :]
    f0o = f0r[:, 1::2, :]
    out0r, out1r = fuse_call(f0r, f1r, f0e, f0o,
                             pp["Bup"], pp["bup"], pp["RH"], pp["T2"], pp["b2f"])
    return out0r, out1r


# ---------------- pure-JAX reference (for correctness check) ----------------
def ref_conv_bn(x, w_hwio, scale, bias, stride, relu=False, residual=None):
    ksize = w_hwio.shape[0]
    pad = 1 if ksize == 3 else 0
    y = lax.conv_general_dilated(
        x, w_hwio, (stride, stride), [(pad, pad), (pad, pad)],
        dimension_numbers=("NHWC", "HWIO", "NHWC"))
    y = y * scale + bias
    if residual is not None:
        y = y + residual
    if relu:
        y = jnp.maximum(y, 0.0)
    return y


def ref_forward(xs_nhwc, params):
    feats = []
    for i in range(NUM_BRANCHES):
        h = xs_nhwc[i]
        for blk in params["branches"][i]:
            t = ref_conv_bn(h, blk["w1"], blk["s1"], blk["b1"], 1, relu=True)
            t = ref_conv_bn(t, blk["w2"], blk["s2"], blk["b2"], 1, relu=False)
            h = jnp.maximum(t + h, 0.0)
        feats.append(h)
    outs = []
    n_out = NUM_BRANCHES if MULTI_SCALE_OUTPUT else 1
    for i in range(n_out):
        N, Hi, Wi, Ci = feats[i].shape
        y = jnp.zeros((N, Hi, Wi, Ci), jnp.float32)
        for j in range(NUM_BRANCHES):
            if j == i:
                y = y + feats[j]
            elif j > i:
                cw = params["fuse"][i][j]
                z = ref_conv_bn(feats[j], cw["w"], cw["s"], cw["b"], 1)
                _, Hj, Wj, _ = z.shape
                R = interp_matrix_2d(Hi, Wi, Hj, Wj)
                up = jnp.einsum("ok,nkc->noc", R, z.reshape(N, Hj * Wj, Ci))
                y = y + up.reshape(N, Hi, Wi, Ci)
            else:
                h = feats[j]
                chain = params["fuse"][i][j]
                for k in range(i - j):
                    last = (k == i - j - 1)
                    cw = chain[k]
                    h = ref_conv_bn(h, cw["w"], cw["s"], cw["b"], 2, relu=not last)
                y = y + h
        outs.append(jnp.maximum(y, 0.0))
    return outs


# ============================ main ============================
if __name__ == "__main__":
    key = jax.random.PRNGKey(0)
    kp, kx0, kx1 = jax.random.split(key, 3)
    params = init_params(kp)
    pp = prepare_params(params)               # fold once, outside the hot path

    # PyTorch-convention NCHW inputs, one per branch (branch j: spatial / 2**j)
    x0_nchw = jax.random.normal(kx0, (BATCH, NUM_INCHANNELS[0], HEIGHTS[0], WIDTHS[0]),
                                jnp.float32)
    x1_nchw = jax.random.normal(kx1, (BATCH, NUM_INCHANNELS[1], HEIGHTS[1], WIDTHS[1]),
                                jnp.float32)
    x0_nhwc = jnp.transpose(x0_nchw, (0, 2, 3, 1))
    x1_nhwc = jnp.transpose(x1_nchw, (0, 2, 3, 1))
    x0r = to_row(x0_nhwc)
    x1r = to_row(x1_nhwc)

    fwd = jax.jit(hr_module_forward)
    out0r, out1r = fwd(x0r, x1r, pp)
    out0r = jax.block_until_ready(out0r)
    out1r = jax.block_until_ready(out1r)

    out0 = from_row(out0r, WIDTHS[0], NUM_INCHANNELS[0])
    out1 = from_row(out1r, WIDTHS[1], NUM_INCHANNELS[1])

    ref0, ref1 = ref_forward([x0_nhwc, x1_nhwc], params)
    np.testing.assert_allclose(np.asarray(out0), np.asarray(ref0), rtol=1e-4, atol=1e-4)
    np.testing.assert_allclose(np.asarray(out1), np.asarray(ref1), rtol=1e-4, atol=1e-4)

    # convert back to NCHW to match PyTorch output convention
    outs_nchw = [jnp.transpose(out0, (0, 3, 1, 2)), jnp.transpose(out1, (0, 3, 1, 2))]
    _ = [jax.block_until_ready(o) for o in outs_nchw]

    print("KERNEL_OK")
</pallas_src>

<mosaic_0001>
module attributes {stable_mosaic.version = 11 : i64} {
  func.func @kernel(%arg0: i32, %arg1: memref<1x16x128xf32, #tpu.memory_space<vmem>>, %arg2: memref<1x8x128xf32, #tpu.memory_space<vmem>>, %arg3: memref<6x128x128xf32, #tpu.memory_space<vmem>>, %arg4: memref<2x128xf32, #tpu.memory_space<vmem>>, %arg5: memref<6x128x128xf32, #tpu.memory_space<vmem>>, %arg6: memref<2x128xf32, #tpu.memory_space<vmem>>, %arg7: memref<1x16x128xf32, #tpu.memory_space<vmem>>, %arg8: memref<1x8x128xf32, #tpu.memory_space<vmem>>) attributes {dimension_semantics = [#tpu.dimension_semantics<parallel>], iteration_bounds = array<i64: 2>, scalar_prefetch = 0 : i64, scratch_operands = 0 : i64, tpu.core_type = #tpu.core_type<tc>, window_params = [{transform_indices = @transform_0, window_bounds = array<i64: 1, 16, 128>}, {transform_indices = @transform_1, window_bounds = array<i64: 1, 8, 128>}, {pipeline_mode = #tpu.pipeline_mode<synchronous>, transform_indices = @transform_2, window_bounds = array<i64: 6, 128, 128>}, {pipeline_mode = #tpu.pipeline_mode<synchronous>, transform_indices = @transform_3, window_bounds = array<i64: 2, 128>}, {pipeline_mode = #tpu.pipeline_mode<synchronous>, transform_indices = @transform_4, window_bounds = array<i64: 6, 128, 128>}, {pipeline_mode = #tpu.pipeline_mode<synchronous>, transform_indices = @transform_5, window_bounds = array<i64: 2, 128>}, {transform_indices = @transform_6, window_bounds = array<i64: 1, 16, 128>}, {transform_indices = @transform_7, window_bounds = array<i64: 1, 8, 128>}]} {
    %cst = arith.constant 0.000000e+00 : f32
    %0 = vector.broadcast %cst : f32 to vector<1x128xf32>
    %c0 = arith.constant 0 : index
    %c0_0 = arith.constant 0 : index
    %c0_1 = arith.constant 0 : index
    %1 = vector.load %arg1[%c0, %c0_0, %c0_1] : memref<1x16x128xf32, #tpu.memory_space<vmem>>, vector<1x16x128xf32>
    %2 = vector.shape_cast %1 : vector<1x16x128xf32> to vector<16x128xf32>
    %3 = tpu.concatenate %0, %2, %0 in 0 : vector<1x128xf32>, vector<16x128xf32>, vector<1x128xf32> -> vector<18x128xf32>
    %4 = vector.extract_strided_slice %3 {offsets = [0, 0], sizes = [16, 128], strides = [1, 1]} : vector<18x128xf32> to vector<16x128xf32>
    %c0_2 = arith.constant 0 : index
    %c0_3 = arith.constant 0 : index
    %c0_4 = arith.constant 0 : index
    %5 = vector.load %arg3[%c0_2, %c0_3, %c0_4] : memref<6x128x128xf32, #tpu.memory_space<vmem>>, vector<1x128x128xf32>
    %6 = vector.shape_cast %5 : vector<1x128x128xf32> to vector<128x128xf32>
    %cst_5 = arith.constant dense<0.000000e+00> : vector<16x128xf32>
    %7 = tpu.matmul %4, %6, %cst_5 {dimension_numbers = #tpu.dot_dimension_numbers<[1], [0], [0], [1], [0, 0, 1, 1], [], []>} : vector<16x128xf32>, vector<128x128xf32>, vector<16x128xf32> -> vector<16x128xf32>
    %8 = vector.extract_strided_slice %3 {offsets = [1, 0], sizes = [16, 128], strides = [1, 1]} : vector<18x128xf32> to vector<16x128xf32>
    %c1 = arith.constant 1 : index
    %c0_6 = arith.constant 0 : index
    %c0_7 = arith.constant 0 : index
    %9 = vector.load %arg3[%c1, %c0_6, %c0_7] : memref<6x128x128xf32, #tpu.memory_space<vmem>>, vector<1x128x128xf32>
    %10 = vector.shape_cast %9 : vector<1x128x128xf32> to vector<128x128xf32>
    %cst_8 = arith.constant dense<0.000000e+00> : vector<16x128xf32>
    %11 = tpu.matmul %8, %10, %cst_8 {dimension_numbers = #tpu.dot_dimension_numbers<[1], [0], [0], [1], [0, 0, 1, 1], [], []>} : vector<16x128xf32>, vector<128x128xf32>, vector<16x128xf32> -> vector<16x128xf32>
    %12 = arith.addf %7, %11 : vector<16x128xf32>
    %13 = vector.extract_strided_slice %3 {offsets = [2, 0], sizes = [16, 128], strides = [1, 1]} : vector<18x128xf32> to vector<16x128xf32>
    %c2 = arith.constant 2 : index
    %c0_9 = arith.constant 0 : index
    %c0_10 = arith.constant 0 : index
    %14 = vector.load %arg3[%c2, %c0_9, %c0_10] : memref<6x128x128xf32, #tpu.memory_space<vmem>>, vector<1x128x128xf32>
    %15 = vector.shape_cast %14 : vector<1x128x128xf32> to vector<128x128xf32>
    %cst_11 = arith.constant dense<0.000000e+00> : vector<16x128xf32>
    %16 = tpu.matmul %13, %15, %cst_11 {dimension_numbers = #tpu.dot_dimension_numbers<[1], [0], [0], [1], [0, 0, 1, 1], [], []>} : vector<16x128xf32>, vector<128x128xf32>, vector<16x128xf32> -> vector<16x128xf32>
    %17 = arith.addf %12, %16 : vector<16x128xf32>
    %c0_12 = arith.constant 0 : index
    %c0_13 = arith.constant 0 : index
    %18 = vector.load %arg4[%c0_12, %c0_13] : memref<2x128xf32, #tpu.memory_space<vmem>>, vector<1x128xf32>
    %19 = vector.broadcast %18 : vector<1x128xf32> to vector<16x128xf32>
    %20 = arith.addf %17, %19 : vector<16x128xf32>
    %cst_14 = arith.constant 0.000000e+00 : f32
    %21 = vector.broadcast %cst_14 : f32 to vector<16x128xf32>
    %22 = arith.maximumf %20, %21 : vector<16x128xf32>
    %23 = tpu.concatenate %0, %22, %0 in 0 : vector<1x128xf32>, vector<16x128xf32>, vector<1x128xf32> -> vector<18x128xf32>
    %24 = vector.extract_strided_slice %23 {offsets = [0, 0], sizes = [16, 128], strides = [1, 1]} : vector<18x128xf32> to vector<16x128xf32>
    %c3 = arith.constant 3 : index
    %c0_15 = arith.constant 0 : index
    %c0_16 = arith.constant 0 : index
    %25 = vector.load %arg3[%c3, %c0_15, %c0_16] : memref<6x128x128xf32, #tpu.memory_space<vmem>>, vector<1x128x128xf32>
    %26 = vector.shape_cast %25 : vector<1x128x128xf32> to vector<128x128xf32>
    %cst_17 = arith.constant dense<0.000000e+00> : vector<16x128xf32>
    %27 = tpu.matmul %24, %26, %cst_17 {dimension_numbers = #tpu.dot_dimension_numbers<[1], [0], [0], [1], [0, 0, 1, 1], [], []>} : vector<16x128xf32>, vector<128x128xf32>, vector<16x128xf32> -> vector<16x128xf32>
    %28 = vector.extract_strided_slice %23 {offsets = [1, 0], sizes = [16, 128], strides = [1, 1]} : vector<18x128xf32> to vector<16x128xf32>
    %c4 = arith.constant 4 : index
    %c0_18 = arith.constant 0 : index
    %c0_19 = arith.constant 0 : index
    %29 = vector.load %arg3[%c4, %c0_18, %c0_19] : memref<6x128x128xf32, #tpu.memory_space<vmem>>, vector<1x128x128xf32>
    %30 = vector.shape_cast %29 : vector<1x128x128xf32> to vector<128x128xf32>
    %cst_20 = arith.constant dense<0.000000e+00> : vector<16x128xf32>
    %31 = tpu.matmul %28, %30, %cst_20 {dimension_numbers = #tpu.dot_dimension_numbers<[1], [0], [0], [1], [0, 0, 1, 1], [], []>} : vector<16x128xf32>, vector<128x128xf32>, vector<16x128xf32> -> vector<16x128xf32>
    %32 = arith.addf %27, %31 : vector<16x128xf32>
    %33 = vector.extract_strided_slice %23 {offsets = [2, 0], sizes = [16, 128], strides = [1, 1]} : vector<18x128xf32> to vector<16x128xf32>
    %c5 = arith.constant 5 : index
    %c0_21 = arith.constant 0 : index
    %c0_22 = arith.constant 0 : index
    %34 = vector.load %arg3[%c5, %c0_21, %c0_22] : memref<6x128x128xf32, #tpu.memory_space<vmem>>, vector<1x128x128xf32>
    %35 = vector.shape_cast %34 : vector<1x128x128xf32> to vector<128x128xf32>
    %cst_23 = arith.constant dense<0.000000e+00> : vector<16x128xf32>
    %36 = tpu.matmul %33, %35, %cst_23 {dimension_numbers = #tpu.dot_dimension_numbers<[1], [0], [0], [1], [0, 0, 1, 1], [], []>} : vector<16x128xf32>, vector<128x128xf32>, vector<16x128xf32> -> vector<16x128xf32>
    %37 = arith.addf %32, %36 : vector<16x128xf32>
    %c1_24 = arith.constant 1 : index
    %c0_25 = arith.constant 0 : index
    %38 = vector.load %arg4[%c1_24, %c0_25] : memref<2x128xf32, #tpu.memory_space<vmem>>, vector<1x128xf32>
    %39 = vector.broadcast %38 : vector<1x128xf32> to vector<16x128xf32>
    %40 = arith.addf %37, %39 : vector<16x128xf32>
    %41 = arith.addf %40, %2 : vector<16x128xf32>
    %cst_26 = arith.constant 0.000000e+00 : f32
    %42 = vector.broadcast %cst_26 : f32 to vector<16x128xf32>
    %43 = arith.maximumf %41, %42 : vector<16x128xf32>
    %c0_27 = arith.constant 0 : index
    %c0_28 = arith.constant 0 : index
    %c0_29 = arith.constant 0 : index
    %44 = vector.load %arg7[%c0_27, %c0_28, %c0_29] : memref<1x16x128xf32, #tpu.memory_space<vmem>>, vector<1x16x128xf32>
    %45 = vector.shape_cast %44 : vector<1x16x128xf32> to vector<16x128xf32>
    %46 = vector.shape_cast %43 : vector<16x128xf32> to vector<1x16x128xf32>
    tpu.vector_store %arg7[%c0_27, %c0_28, %c0_29], %46 {strides = array<i32>} : memref<1x16x128xf32, #tpu.memory_space<vmem>>, vector<1x16x128xf32>,
    %c0_30 = arith.constant 0 : index
    %c0_31 = arith.constant 0 : index
    %c0_32 = arith.constant 0 : index
    %47 = vector.load %arg2[%c0_30, %c0_31, %c0_32] : memref<1x8x128xf32, #tpu.memory_space<vmem>>, vector<1x8x128xf32>
    %48 = vector.shape_cast %47 : vector<1x8x128xf32> to vector<8x128xf32>
    %49 = tpu.concatenate %0, %48, %0 in 0 : vector<1x128xf32>, vector<8x128xf32>, vector<1x128xf32> -> vector<10x128xf32>
    %50 = vector.extract_strided_slice %49 {offsets = [0, 0], sizes = [8, 128], strides = [1, 1]} : vector<10x128xf32> to vector<8x128xf32>
    %c0_33 = arith.constant 0 : index
    %c0_34 = arith.constant 0 : index
    %c0_35 = arith.constant 0 : index
    %51 = vector.load %arg5[%c0_33, %c0_34, %c0_35] : memref<6x128x128xf32, #tpu.memory_space<vmem>>, vector<1x128x128xf32>
    %52 = vector.shape_cast %51 : vector<1x128x128xf32> to vector<128x128xf32>
    %cst_36 = arith.constant dense<0.000000e+00> : vector<8x128xf32>
    %53 = tpu.matmul %50, %52, %cst_36 {dimension_numbers = #tpu.dot_dimension_numbers<[1], [0], [0], [1], [0, 0, 1, 1], [], []>} : vector<8x128xf32>, vector<128x128xf32>, vector<8x128xf32> -> vector<8x128xf32>
    %54 = vector.extract_strided_slice %49 {offsets = [1, 0], sizes = [8, 128], strides = [1, 1]} : vector<10x128xf32> to vector<8x128xf32>
    %c1_37 = arith.constant 1 : index
    %c0_38 = arith.constant 0 : index
    %c0_39 = arith.constant 0 : index
    %55 = vector.load %arg5[%c1_37, %c0_38, %c0_39] : memref<6x128x128xf32, #tpu.memory_space<vmem>>, vector<1x128x128xf32>
    %56 = vector.shape_cast %55 : vector<1x128x128xf32> to vector<128x128xf32>
    %cst_40 = arith.constant dense<0.000000e+00> : vector<8x128xf32>
    %57 = tpu.matmul %54, %56, %cst_40 {dimension_numbers = #tpu.dot_dimension_numbers<[1], [0], [0], [1], [0, 0, 1, 1], [], []>} : vector<8x128xf32>, vector<128x128xf32>, vector<8x128xf32> -> vector<8x128xf32>
    %58 = arith.addf %53, %57 : vector<8x128xf32>
    %59 = vector.extract_strided_slice %49 {offsets = [2, 0], sizes = [8, 128], strides = [1, 1]} : vector<10x128xf32> to vector<8x128xf32>
    %c2_41 = arith.constant 2 : index
    %c0_42 = arith.constant 0 : index
    %c0_43 = arith.constant 0 : index
    %60 = vector.load %arg5[%c2_41, %c0_42, %c0_43] : memref<6x128x128xf32, #tpu.memory_space<vmem>>, vector<1x128x128xf32>
    %61 = vector.shape_cast %60 : vector<1x128x128xf32> to vector<128x128xf32>
    %cst_44 = arith.constant dense<0.000000e+00> : vector<8x128xf32>
    %62 = tpu.matmul %59, %61, %cst_44 {dimension_numbers = #tpu.dot_dimension_numbers<[1], [0], [0], [1], [0, 0, 1, 1], [], []>} : vector<8x128xf32>, vector<128x128xf32>, vector<8x128xf32> -> vector<8x128xf32>
    %63 = arith.addf %58, %62 : vector<8x128xf32>
    %c0_45 = arith.constant 0 : index
    %c0_46 = arith.constant 0 : index
    %64 = vector.load %arg6[%c0_45, %c0_46] : memref<2x128xf32, #tpu.memory_space<vmem>>, vector<1x128xf32>
    %65 = vector.broadcast %64 : vector<1x128xf32> to vector<8x128xf32>
    %66 = arith.addf %63, %65 : vector<8x128xf32>
    %cst_47 = arith.constant 0.000000e+00 : f32
    %67 = vector.broadcast %cst_47 : f32 to vector<8x128xf32>
    %68 = arith.maximumf %66, %67 : vector<8x128xf32>
    %69 = tpu.concatenate %0, %68, %0 in 0 : vector<1x128xf32>, vector<8x128xf32>, vector<1x128xf32> -> vector<10x128xf32>
    %70 = vector.extract_strided_slice %69 {offsets = [0, 0], sizes = [8, 128], strides = [1, 1]} : vector<10x128xf32> to vector<8x128xf32>
    %c3_48 = arith.constant 3 : index
    %c0_49 = arith.constant 0 : index
    %c0_50 = arith.constant 0 : index
    %71 = vector.load %arg5[%c3_48, %c0_49, %c0_50] : memref<6x128x128xf32, #tpu.memory_space<vmem>>, vector<1x128x128xf32>
    %72 = vector.shape_cast %71 : vector<1x128x128xf32> to vector<128x128xf32>
    %cst_51 = arith.constant dense<0.000000e+00> : vector<8x128xf32>
    %73 = tpu.matmul %70, %72, %cst_51 {dimension_numbers = #tpu.dot_dimension_numbers<[1], [0], [0], [1], [0, 0, 1, 1], [], []>} : vector<8x128xf32>, vector<128x128xf32>, vector<8x128xf32> -> vector<8x128xf32>
    %74 = vector.extract_strided_slice %69 {offsets = [1, 0], sizes = [8, 128], strides = [1, 1]} : vector<10x128xf32> to vector<8x128xf32>
    %c4_52 = arith.constant 4 : index
    %c0_53 = arith.constant 0 : index
    %c0_54 = arith.constant 0 : index
    %75 = vector.load %arg5[%c4_52, %c0_53, %c0_54] : memref<6x128x128xf32, #tpu.memory_space<vmem>>, vector<1x128x128xf32>
    %76 = vector.shape_cast %75 : vector<1x128x128xf32> to vector<128x128xf32>
    %cst_55 = arith.constant dense<0.000000e+00> : vector<8x128xf32>
    %77 = tpu.matmul %74, %76, %cst_55 {dimension_numbers = #tpu.dot_dimension_numbers<[1], [0], [0], [1], [0, 0, 1, 1], [], []>} : vector<8x128xf32>, vector<128x128xf32>, vector<8x128xf32> -> vector<8x128xf32>
    %78 = arith.addf %73, %77 : vector<8x128xf32>
    %79 = vector.extract_strided_slice %69 {offsets = [2, 0], sizes = [8, 128], strides = [1, 1]} : vector<10x128xf32> to vector<8x128xf32>
    %c5_56 = arith.constant 5 : index
    %c0_57 = arith.constant 0 : index
    %c0_58 = arith.constant 0 : index
    %80 = vector.load %arg5[%c5_56, %c0_57, %c0_58] : memref<6x128x128xf32, #tpu.memory_space<vmem>>, vector<1x128x128xf32>
    %81 = vector.shape_cast %80 : vector<1x128x128xf32> to vector<128x128xf32>
    %cst_59 = arith.constant dense<0.000000e+00> : vector<8x128xf32>
    %82 = tpu.matmul %79, %81, %cst_59 {dimension_numbers = #tpu.dot_dimension_numbers<[1], [0], [0], [1], [0, 0, 1, 1], [], []>} : vector<8x128xf32>, vector<128x128xf32>, vector<8x128xf32> -> vector<8x128xf32>
    %83 = arith.addf %78, %82 : vector<8x128xf32>
    %c1_60 = arith.constant 1 : index
    %c0_61 = arith.constant 0 : index
    %84 = vector.load %arg6[%c1_60, %c0_61] : memref<2x128xf32, #tpu.memory_space<vmem>>, vector<1x128xf32>
    %85 = vector.broadcast %84 : vector<1x128xf32> to vector<8x128xf32>
    %86 = arith.addf %83, %85 : vector<8x128xf32>
    %87 = arith.addf %86, %48 : vector<8x128xf32>
    %cst_62 = arith.constant 0.000000e+00 : f32
    %88 = vector.broadcast %cst_62 : f32 to vector<8x128xf32>
    %89 = arith.maximumf %87, %88 : vector<8x128xf32>
    %c0_63 = arith.constant 0 : index
    %c0_64 = arith.constant 0 : index
    %c0_65 = arith.constant 0 : index
    %90 = vector.load %arg8[%c0_63, %c0_64, %c0_65] : memref<1x8x128xf32, #tpu.memory_space<vmem>>, vector<1x8x128xf32>
    %91 = vector.shape_cast %90 : vector<1x8x128xf32> to vector<8x128xf32>
    %92 = vector.shape_cast %89 : vector<8x128xf32> to vector<1x8x128xf32>
    tpu.vector_store %arg8[%c0_63, %c0_64, %c0_65], %92 {strides = array<i32>} : memref<1x8x128xf32, #tpu.memory_space<vmem>>, vector<1x8x128xf32>,
    return
  }
  func.func @transform_0(%arg0: i32) -> (i32, i32, i32) {
    %c0_i32 = arith.constant 0 : i32
    %c0_i32_0 = arith.constant 0 : i32
    %c0_i32_1 = arith.constant 0 : i32
    return %arg0, %c0_i32, %c0_i32_0 : i32, i32, i32
  }
  func.func @transform_1(%arg0: i32) -> (i32, i32, i32) {
    %c0_i32 = arith.constant 0 : i32
    %c0_i32_0 = arith.constant 0 : i32
    %c0_i32_1 = arith.constant 0 : i32
    return %arg0, %c0_i32, %c0_i32_0 : i32, i32, i32
  }
  func.func @transform_2(%arg0: i32) -> (i32, i32, i32) {
    %c0_i32 = arith.constant 0 : i32
    %c0_i32_0 = arith.constant 0 : i32
    %c0_i32_1 = arith.constant 0 : i32
    %c0_i32_2 = arith.constant 0 : i32
    return %c0_i32, %c0_i32_0, %c0_i32_1 : i32, i32, i32
  }
  func.func @transform_3(%arg0: i32) -> (i32, i32) {
    %c0_i32 = arith.constant 0 : i32
    %c0_i32_0 = arith.constant 0 : i32
    %c0_i32_1 = arith.constant 0 : i32
    return %c0_i32, %c0_i32_0 : i32, i32
  }
  func.func @transform_4(%arg0: i32) -> (i32, i32, i32) {
    %c0_i32 = arith.constant 0 : i32
    %c0_i32_0 = arith.constant 0 : i32
    %c0_i32_1 = arith.constant 0 : i32
    %c0_i32_2 = arith.constant 0 : i32
    return %c0_i32, %c0_i32_0, %c0_i32_1 : i32, i32, i32
  }
  func.func @transform_5(%arg0: i32) -> (i32, i32) {
    %c0_i32 = arith.constant 0 : i32
    %c0_i32_0 = arith.constant 0 : i32
    %c0_i32_1 = arith.constant 0 : i32
    return %c0_i32, %c0_i32_0 : i32, i32
  }
  func.func @transform_6(%arg0: i32) -> (i32, i32, i32) {
    %c0_i32 = arith.constant 0 : i32
    %c0_i32_0 = arith.constant 0 : i32
    %c0_i32_1 = arith.constant 0 : i32
    return %arg0, %c0_i32, %c0_i32_0 : i32, i32, i32
  }
  func.func @transform_7(%arg0: i32) -> (i32, i32, i32) {
    %c0_i32 = arith.constant 0 : i32
    %c0_i32_0 = arith.constant 0 : i32
    %c0_i32_1 = arith.constant 0 : i32
    return %arg0, %c0_i32, %c0_i32_0 : i32, i32, i32
  }
}

module attributes {stable_mosaic.version = 11 : i64} {
  func.func @kernel(%arg0: i32, %arg1: memref<1x16x128xf32, #tpu.memory_space<vmem>>, %arg2: memref<1x8x128xf32, #tpu.memory_space<vmem>>, %arg3: memref<1x8x128xf32, #tpu.memory_space<vmem>>, %arg4: memref<1x8x128xf32, #tpu.memory_space<vmem>>, %arg5: memref<128x128xf32, #tpu.memory_space<vmem>>, %arg6: memref<1x128xf32, #tpu.memory_space<vmem>>, %arg7: memref<16x8xf32, #tpu.memory_space<vmem>>, %arg8: memref<3x128x128xf32, #tpu.memory_space<vmem>>, %arg9: memref<1x128xf32, #tpu.memory_space<vmem>>, %arg10: memref<1x16x128xf32, #tpu.memory_space<vmem>>, %arg11: memref<1x8x128xf32, #tpu.memory_space<vmem>>) attributes {dimension_semantics = [#tpu.dimension_semantics<parallel>], iteration_bounds = array<i64: 2>, scalar_prefetch = 0 : i64, scratch_operands = 0 : i64, tpu.core_type = #tpu.core_type<tc>, window_params = [{transform_indices = @transform_0, window_bounds = array<i64: 1, 16, 128>}, {transform_indices = @transform_1, window_bounds = array<i64: 1, 8, 128>}, {transform_indices = @transform_2, window_bounds = array<i64: 1, 8, 128>}, {transform_indices = @transform_3, window_bounds = array<i64: 1, 8, 128>}, {pipeline_mode = #tpu.pipeline_mode<synchronous>, transform_indices = @transform_4, window_bounds = array<i64: 128, 128>}, {pipeline_mode = #tpu.pipeline_mode<synchronous>, transform_indices = @transform_5, window_bounds = array<i64: 1, 128>}, {pipeline_mode = #tpu.pipeline_mode<synchronous>, transform_indices = @transform_6, window_bounds = array<i64: 16, 8>}, {pipeline_mode = #tpu.pipeline_mode<synchronous>, transform_indices = @transform_7, window_bounds = array<i64: 3, 128, 128>}, {pipeline_mode = #tpu.pipeline_mode<synchronous>, transform_indices = @transform_8, window_bounds = array<i64: 1, 128>}, {transform_indices = @transform_9, window_bounds = array<i64: 1, 16, 128>}, {transform_indices = @transform_10, window_bounds = array<i64: 1, 8, 128>}]} {
    %c0 = arith.constant 0 : index
    %c0_0 = arith.constant 0 : index
    %c0_1 = arith.constant 0 : index
    %0 = vector.load %arg1[%c0, %c0_0, %c0_1] : memref<1x16x128xf32, #tpu.memory_space<vmem>>, vector<1x16x128xf32>
    %1 = vector.shape_cast %0 : vector<1x16x128xf32> to vector<16x128xf32>
    %c0_2 = arith.constant 0 : index
    %c0_3 = arith.constant 0 : index
    %c0_4 = arith.constant 0 : index
    %2 = vector.load %arg2[%c0_2, %c0_3, %c0_4] : memref<1x8x128xf32, #tpu.memory_space<vmem>>, vector<1x8x128xf32>
    %3 = vector.shape_cast %2 : vector<1x8x128xf32> to vector<8x128xf32>
    %c0_5 = arith.constant 0 : index
    %c0_6 = arith.constant 0 : index
    %4 = vector.load %arg5[%c0_5, %c0_6] : memref<128x128xf32, #tpu.memory_space<vmem>>, vector<128x128xf32>
    %cst = arith.constant dense<0.000000e+00> : vector<8x128xf32>
    %5 = tpu.matmul %3, %4, %cst {dimension_numbers = #tpu.dot_dimension_numbers<[1], [0], [0], [1], [0, 0, 1, 1], [], []>} : vector<8x128xf32>, vector<128x128xf32>, vector<8x128xf32> -> vector<8x128xf32>
    %c0_7 = arith.constant 0 : index
    %c0_8 = arith.constant 0 : index
    %6 = vector.load %arg7[%c0_7, %c0_8] : memref<16x8xf32, #tpu.memory_space<vmem>>, vector<16x8xf32>
    %cst_9 = arith.constant dense<0.000000e+00> : vector<16x128xf32>
    %7 = tpu.matmul %6, %5, %cst_9 {dimension_numbers = #tpu.dot_dimension_numbers<[1], [0], [0], [1], [0, 0, 1, 1], [], []>} : vector<16x8xf32>, vector<8x128xf32>, vector<16x128xf32> -> vector<16x128xf32>
    %8 = arith.addf %1, %7 : vector<16x128xf32>
    %c0_10 = arith.constant 0 : index
    %c0_11 = arith.constant 0 : index
    %9 = vector.load %arg6[%c0_10, %c0_11] : memref<1x128xf32, #tpu.memory_space<vmem>>, vector<1x128xf32>
    %10 = vector.broadcast %9 : vector<1x128xf32> to vector<16x128xf32>
    %11 = arith.addf %8, %10 : vector<16x128xf32>
    %cst_12 = arith.constant 0.000000e+00 : f32
    %12 = vector.broadcast %cst_12 : f32 to vector<16x128xf32>
    %13 = arith.maximumf %11, %12 : vector<16x128xf32>
    %c0_13 = arith.constant 0 : index
    %c0_14 = arith.constant 0 : index
    %c0_15 = arith.constant 0 : index
    %14 = vector.load %arg10[%c0_13, %c0_14, %c0_15] : memref<1x16x128xf32, #tpu.memory_space<vmem>>, vector<1x16x128xf32>
    %15 = vector.shape_cast %14 : vector<1x16x128xf32> to vector<16x128xf32>
    %16 = vector.shape_cast %13 : vector<16x128xf32> to vector<1x16x128xf32>
    tpu.vector_store %arg10[%c0_13, %c0_14, %c0_15], %16 {strides = array<i32>} : memref<1x16x128xf32, #tpu.memory_space<vmem>>, vector<1x16x128xf32>,
    %c0_16 = arith.constant 0 : index
    %c0_17 = arith.constant 0 : index
    %c0_18 = arith.constant 0 : index
    %17 = vector.load %arg3[%c0_16, %c0_17, %c0_18] : memref<1x8x128xf32, #tpu.memory_space<vmem>>, vector<1x8x128xf32>
    %18 = vector.shape_cast %17 : vector<1x8x128xf32> to vector<8x128xf32>
    %c0_19 = arith.constant 0 : index
    %c0_20 = arith.constant 0 : index
    %c0_21 = arith.constant 0 : index
    %19 = vector.load %arg4[%c0_19, %c0_20, %c0_21] : memref<1x8x128xf32, #tpu.memory_space<vmem>>, vector<1x8x128xf32>
    %20 = vector.shape_cast %19 : vector<1x8x128xf32> to vector<8x128xf32>
    %cst_22 = arith.constant 0.000000e+00 : f32
    %21 = vector.broadcast %cst_22 : f32 to vector<1x128xf32>
    %22 = vector.extract_strided_slice %20 {offsets = [0, 0], sizes = [7, 128], strides = [1, 1]} : vector<8x128xf32> to vector<7x128xf32>
    %23 = tpu.concatenate %21, %22 in 0 : vector<1x128xf32>, vector<7x128xf32> -> vector<8x128xf32>
    %c0_23 = arith.constant 0 : index
    %c0_24 = arith.constant 0 : index
    %c0_25 = arith.constant 0 : index
    %24 = vector.load %arg8[%c0_23, %c0_24, %c0_25] : memref<3x128x128xf32, #tpu.memory_space<vmem>>, vector<1x128x128xf32>
    %25 = vector.shape_cast %24 : vector<1x128x128xf32> to vector<128x128xf32>
    %cst_26 = arith.constant dense<0.000000e+00> : vector<8x128xf32>
    %26 = tpu.matmul %23, %25, %cst_26 {dimension_numbers = #tpu.dot_dimension_numbers<[1], [0], [0], [1], [0, 0, 1, 1], [], []>} : vector<8x128xf32>, vector<128x128xf32>, vector<8x128xf32> -> vector<8x128xf32>
    %c1 = arith.constant 1 : index
    %c0_27 = arith.constant 0 : index
    %c0_28 = arith.constant 0 : index
    %27 = vector.load %arg8[%c1, %c0_27, %c0_28] : memref<3x128x128xf32, #tpu.memory_space<vmem>>, vector<1x128x128xf32>
    %28 = vector.shape_cast %27 : vector<1x128x128xf32> to vector<128x128xf32>
    %cst_29 = arith.constant dense<0.000000e+00> : vector<8x128xf32>
    %29 = tpu.matmul %18, %28, %cst_29 {dimension_numbers = #tpu.dot_dimension_numbers<[1], [0], [0], [1], [0, 0, 1, 1], [], []>} : vector<8x128xf32>, vector<128x128xf32>, vector<8x128xf32> -> vector<8x128xf32>
    %30 = arith.addf %26, %29 : vector<8x128xf32>
    %c2 = arith.constant 2 : index
    %c0_30 = arith.constant 0 : index
    %c0_31 = arith.constant 0 : index
    %31 = vector.load %arg8[%c2, %c0_30, %c0_31] : memref<3x128x128xf32, #tpu.memory_space<vmem>>, vector<1x128x128xf32>
    %32 = vector.shape_cast %31 : vector<1x128x128xf32> to vector<128x128xf32>
    %cst_32 = arith.constant dense<0.000000e+00> : vector<8x128xf32>
    %33 = tpu.matmul %20, %32, %cst_32 {dimension_numbers = #tpu.dot_dimension_numbers<[1], [0], [0], [1], [0, 0, 1, 1], [], []>} : vector<8x128xf32>, vector<128x128xf32>, vector<8x128xf32> -> vector<8x128xf32>
    %34 = arith.addf %30, %33 : vector<8x128xf32>
    %35 = arith.addf %3, %34 : vector<8x128xf32>
    %c0_33 = arith.constant 0 : index
    %c0_34 = arith.constant 0 : index
    %36 = vector.load %arg9[%c0_33, %c0_34] : memref<1x128xf32, #tpu.memory_space<vmem>>, vector<1x128xf32>
    %37 = vector.broadcast %36 : vector<1x128xf32> to vector<8x128xf32>
    %38 = arith.addf %35, %37 : vector<8x128xf32>
    %cst_35 = arith.constant 0.000000e+00 : f32
    %39 = vector.broadcast %cst_35 : f32 to vector<8x128xf32>
    %40 = arith.maximumf %38, %39 : vector<8x128xf32>
    %c0_36 = arith.constant 0 : index
    %c0_37 = arith.constant 0 : index
    %c0_38 = arith.constant 0 : index
    %41 = vector.load %arg11[%c0_36, %c0_37, %c0_38] : memref<1x8x128xf32, #tpu.memory_space<vmem>>, vector<1x8x128xf32>
    %42 = vector.shape_cast %41 : vector<1x8x128xf32> to vector<8x128xf32>
    %43 = vector.shape_cast %40 : vector<8x128xf32> to vector<1x8x128xf32>
    tpu.vector_store %arg11[%c0_36, %c0_37, %c0_38], %43 {strides = array<i32>} : memref<1x8x128xf32, #tpu.memory_space<vmem>>, vector<1x8x128xf32>,
    return
  }
  func.func @transform_0(%arg0: i32) -> (i32, i32, i32) {
    %c0_i32 = arith.constant 0 : i32
    %c0_i32_0 = arith.constant 0 : i32
    %c0_i32_1 = arith.constant 0 : i32
    return %arg0, %c0_i32, %c0_i32_0 : i32, i32, i32
  }
  func.func @transform_1(%arg0: i32) -> (i32, i32, i32) {
    %c0_i32 = arith.constant 0 : i32
    %c0_i32_0 = arith.constant 0 : i32
    %c0_i32_1 = arith.constant 0 : i32
    return %arg0, %c0_i32, %c0_i32_0 : i32, i32, i32
  }
  func.func @transform_2(%arg0: i32) -> (i32, i32, i32) {
    %c0_i32 = arith.constant 0 : i32
    %c0_i32_0 = arith.constant 0 : i32
    %c0_i32_1 = arith.constant 0 : i32
    return %arg0, %c0_i32, %c0_i32_0 : i32, i32, i32
  }
  func.func @transform_3(%arg0: i32) -> (i32, i32, i32) {
    %c0_i32 = arith.constant 0 : i32
    %c0_i32_0 = arith.constant 0 : i32
    %c0_i32_1 = arith.constant 0 : i32
    return %arg0, %c0_i32, %c0_i32_0 : i32, i32, i32
  }
  func.func @transform_4(%arg0: i32) -> (i32, i32) {
    %c0_i32 = arith.constant 0 : i32
    %c0_i32_0 = arith.constant 0 : i32
    %c0_i32_1 = arith.constant 0 : i32
    return %c0_i32, %c0_i32_0 : i32, i32
  }
  func.func @transform_5(%arg0: i32) -> (i32, i32) {
    %c0_i32 = arith.constant 0 : i32
    %c0_i32_0 = arith.constant 0 : i32
    %c0_i32_1 = arith.constant 0 : i32
    return %c0_i32, %c0_i32_0 : i32, i32
  }
  func.func @transform_6(%arg0: i32) -> (i32, i32) {
    %c0_i32 = arith.constant 0 : i32
    %c0_i32_0 = arith.constant 0 : i32
    %c0_i32_1 = arith.constant 0 : i32
    return %c0_i32, %c0_i32_0 : i32, i32
  }
  func.func @transform_7(%arg0: i32) -> (i32, i32, i32) {
    %c0_i32 = arith.constant 0 : i32
    %c0_i32_0 = arith.constant 0 : i32
    %c0_i32_1 = arith.constant 0 : i32
    %c0_i32_2 = arith.constant 0 : i32
    return %c0_i32, %c0_i32_0, %c0_i32_1 : i32, i32, i32
  }
  func.func @transform_8(%arg0: i32) -> (i32, i32) {
    %c0_i32 = arith.constant 0 : i32
    %c0_i32_0 = arith.constant 0 : i32
    %c0_i32_1 = arith.constant 0 : i32
    return %c0_i32, %c0_i32_0 : i32, i32
  }
  func.func @transform_9(%arg0: i32) -> (i32, i32, i32) {
    %c0_i32 = arith.constant 0 : i32
    %c0_i32_0 = arith.constant 0 : i32
    %c0_i32_1 = arith.constant 0 : i32
    return %arg0, %c0_i32, %c0_i32_0 : i32, i32, i32
  }
  func.func @transform_10(%arg0: i32) -> (i32, i32, i32) {
    %c0_i32 = arith.constant 0 : i32
    %c0_i32_0 = arith.constant 0 : i32
    %c0_i32_1 = arith.constant 0 : i32
    return %arg0, %c0_i32, %c0_i32_0 : i32, i32, i32
  }
}

</mosaic_0001>

<bundles_post_ra>
// kernel: hr_module_forward.3
= control target key start
LH: loop header
LB: loop body
LE: loop exit
PB: predicated region body
PF: predicated region fallthrough
CT: control target
= control target key end

     0   :  { %s2296_s0 = inlined_call_operand.hbm [shape: f32[2,16,128], index: 0, kind: input, shape index: {}, may-alias: {0,9}]   ;;  %s2297_s1 = inlined_call_operand.hbm [shape: f32[2,8,128], index: 1, kind: input, shape index: {}, may-alias: {1,10}]   ;;  %s2298_s2 = inlined_call_operand.vmem [shape: f32[2,8,128], index: 2, kind: input, shape index: {}]   ;;  %s2299_s3 = inlined_call_operand.vmem [shape: f32[2,8,128], index: 3, kind: input, shape index: {}]   ;;  %s2300_s4 = inlined_call_operand.vmem [shape: f32[128,128], index: 4, kind: input, shape index: {}]   ;;  %s2301_s5 = inlined_call_operand.vmem [shape: f32[1,128], index: 5, kind: input, shape index: {}]   ;;  %s2302_s6 = inlined_call_operand.vmem [shape: f32[16,8], index: 6, kind: input, shape index: {}]   ;;  %s2303_s7 = inlined_call_operand.vmem [shape: f32[3,128,128], index: 7, kind: input, shape index: {}]   ;;  %s2304_s8 = inlined_call_operand.vmem [shape: f32[1,128], index: 8, kind: input, shape index: {}]   ;;  %s2305_s9 = inlined_call_operand.hbm [shape: f32[2,16,128], index: 9, kind: output, shape index: {0}, may-alias: {0,9}]   ;;  %s2306_s10 = inlined_call_operand.hbm [shape: f32[2,8,128], index: 10, kind: output, shape index: {1}, may-alias: {1,10}]  }
   0x1   :  { %2313 = sst [smem:[#allocation18_spill]] %s2296_s0 }
   0x2   :  { %16 = vsyncpa [#allocation3], 0 }
   0x3   :  { %18 = vsyncpa [#allocation3 + $0x1], 0 }
   0x4   :  { %19 = vsyncpa [#allocation6], 0 }
   0x5   :  { %21 = vsyncpa [#allocation6 + $0x1], 0 }
   0x6   :  { %22 = vsyncpa [#allocation4], 0 }
   0x7   :  { %24 = vsyncpa [#allocation4 + $0x1], 0 }
   0x8   :  { %25 = vsyncpa [#allocation9], 0 }
   0x9   :  { %27 = vsyncpa [#allocation9 + $0x1], 0  ;;  %s1778_s13 = smov 0   ;;  %s1780_s14 = smov 0  }
   0xa   :  { %s1782_s15 = smov 0   ;;  %s1784_s16 = smov 0  }
   0xb LB: > { %2314 = sst [smem:[#allocation14_spill]] %s1706_s15  ;;  %s1799_s17 = sadd.s32 4294967295, %s1710_s16   ;;  %s1710_s16 = sphi %s1784_s16, %s2331_s16   ;;  %s1706_s15 = sphi %s1782_s15, %s2333_s15   ;;  %s1702_s14 = sphi %s1780_s14, %s2335_s14   ;;  %s1698_s13 = sphi %s1778_s13, %s2334_s13  }
   0xc   : > { %s1111_s18 = sadd.s32 4294967294, %s1710_s16   ;;  %s1803_s19 = sadd.s32 1, %s1710_s16  }
   0xd   : > { %2315 = sst [smem:[#allocation15_spill]] %s1803_s19  ;;  %s40_s20 = sadd.s32 1, %s1706_s15 }
   0xe   : > { %s37_s21 = ssub.s32 %s1710_s16, %s1803_s19  ;;  %p47_p0 = scmp.ne.s32.totalorder %s1706_s15, %s1702_s14 }
   0xf   : > { %p38_p1 = scmp.eq.s32.totalorder %s37_s21, 0  ;;  %p48_p2 = scmp.eq.s32.totalorder %s1710_s16, 0 }
  0x10   : > { %p53_p3 = scmp.ne.s32.totalorder %s1702_s14, %s1698_s13  ;;  %p54_p4 = scmp.eq.s32.totalorder %s1799_s17, 0 }
  0x11   : > { %s1815_s22 = scalar_select %p38_p1, %s1706_s15, %s40_s20  }
  0x12   : > { %p1817_p5 = por %p48_p2, %p47_p0  ;;  %p1821_p6 = por %p54_p4, %p53_p3 }
  0x13   : > { %2316 = sst [smem:[#allocation16_spill]] %s1815_s22  ;;  %p260_p7 = scmp.eq.s32.totalorder %s1799_s17, 1 }
  0x14   : > { %s2318_s24 = scalar_select %p1821_p6, 1, 0 }
  0x15   : > { %p266_p8 = scmp.eq.s32.totalorder %s1111_s18, 1  ;;  %p1507_p10 = scmp.lt.s32.totalorder %s1710_s16, 2 }
  0x16   : > { %p1828_p11 = por %p260_p7, %p47_p0  ;;  %s1837_s27 = sand.u32 1, %s1706_s15  }
  0x17   : > { %p1832_p12 = por %p266_p8, %p53_p3  ;;  %s1171_s28 = sshll.u32 %s1710_s16, 8 }
  0x18   : > { %s2319_s25 = scalar_select %p1828_p11, 1, 0 }
  0x19   : > { %s2320_s26 = scalar_select %p1832_p12, 1, 0 }
  0x1a   : > { %s1114_s29 = sshll.u32 %s1837_s27, 4  ;;  %s2322_s0 = sld [smem:[#allocation18_spill]] }
  0x1b   : > { %2321 = sst [smem:[#allocation17_spill]] %s2320_s26  ;;  %s331_s18 = scalar_lea.vmem [#allocation2], %s1114_s29 }
  0x1c   : > { %s338_s20 = sshll.u32 %s331_s18, 4  ;;  %p1848_p13 = pnand %p1507_p10, %p1817_p5  ;;  %s1852_s20 = int_to_ptr.vmem [resolvable:$true] %s338_s20 }
  0x1d   : > { %s328_s22 = scalar_lea.sflag [#allocation3], %s1837_s27 }
  0x1e   : > { %p1550_p1 = pneg %p1848_p13 }
  0x20   : > { %s1844_s12 = scalar_lea.hbm %s2322_s0, %s1171_s28  ;;  %s1553_s23 = scalar_lea.hbm %s2322_s0, 512 }
  0x21   : > { %s1548_s15 = scalar_lea.hbm %s1844_s12, 256  ;;  %p1554_p4 = scmp.lt.u32.totalorder %s1844_s12, %s2322_s0 }
  0x22   : > { %p1549_p0 = scmp.ne.s32.totalorder %s1844_s12, %s1548_s15  ;;  %p1555_p5 = scmp.lt.u32.totalorder %s1553_s23, %s1548_s15 }
  0x23   : > { %p1557_p8 = scmp.lt.u32.totalorder %s1548_s15, %s1844_s12 }
  0x24   : > { %p1551_p2 = pnand %p1550_p1, %p1549_p0  ;;  %p1556_p7 = por %p1555_p5, %p1554_p4 }
  0x26   : > { %p1552_p3 = pneg %p1551_p2  ;;  %p1558_p10 = por %p1557_p8, %p1556_p7 }
  0x28   : > { %p1559_p9 = pnand %p1558_p10, %p1552_p3 }
  0x2a   : > { %1562 = shalt.err (!%p1559_p9)
}
  0x2b   : > { %s1563_s18 = scalar_lea.vmem %s1852_s20, 256  ;;  %s1712_s28 = smov [#allocation2]  }
  0x2c   : > { %p1564_p0 = scmp.ne.s32.totalorder %s1852_s20, %s1563_s18  ;;  %s1568_s29 = sshll.u32 %s1712_s28, 4  ;;  %s1569_s29 = int_to_ptr.vmem [resolvable:$false] %s1568_s29 }
  0x2d   : > { %s1570_s30 = scalar_lea.vmem %s1569_s29, 512  ;;  %p1571_p11 = scmp.lt.s32.totalorder %s1852_s20, %s1569_s29 }
  0x2e   : > { %p1566_p2 = pnand %p1564_p0, %p1550_p1  ;;  %p1572_p4 = scmp.lt.s32.totalorder %s1570_s30, %s1563_s18 }
  0x30   : > { %p1567_p12 = pneg %p1566_p2  ;;  %p1573_p5 = por %p1572_p4, %p1571_p11 }
  0x32   : > { %p1574_p7 = pnand %p1573_p5, %p1567_p12 }
  0x34   : > { %1577 = shalt.err (!%p1574_p7)
}
  0x35   : > { %s1713_s15 = smov 128   ;;  %s1714_s23 = smov 8  }
  0x36   : > { %1496 = dma.hbm_to_vmem [thread:$0]  (!%p1848_p13), %s1844_s12, 256, %s1852_s20, %s328_s22, %s1713_s15, %s1713_s15, %s1714_s23  }
  0x37   : > { %p1119_p9 = scmp.ge.s32.totalorder %s1710_s16, 1  ;;  %p378_p3 = scmp.lt.s32.totalorder %s1710_s16, 3 }
  0x38   : > { %s1117_s11 = sshll.u32 %s1837_s27, 3  ;;  %s1118_s28 = sshll.u32 %s1710_s16, 7 }
  0x39   : > { %p1885_p11 = pnand %p1119_p9, %p378_p3  ;;  %s352_s29 = scalar_lea.vmem [#allocation5], %s1117_s11 }
  0x3a   : > { %s359_s30 = sshll.u32 %s352_s29, 4  ;;  %s1893_s26 = scalar_lea.hbm %s2297_s1, %s1118_s28  ;;  %s360_s30 = int_to_ptr.vmem [resolvable:$true] %s359_s30 }
  0x3b   : > { %s2324_s18 = scalar_select %p1885_p11, 1, 0 }
  0x3c   : > { %s349_s22 = scalar_lea.sflag [#allocation6], %s1837_s27  ;;  %s1578_s12 = scalar_lea.hbm %s1893_s26, 128 }
  0x3d   : > { %p1579_p12 = scmp.ne.s32.totalorder %s1893_s26, %s1578_s12  ;;  %s1583_s23 = scalar_lea.hbm %s2297_s1, 256 }
  0x3e   : > { %p1584_p0 = scmp.lt.u32.totalorder %s1893_s26, %s2297_s1  ;;  %p1585_p2 = scmp.lt.u32.totalorder %s1583_s23, %s1578_s12 }
  0x3f   : > { %p1581_p8 = pnand %p1579_p12, %p1550_p1  ;;  %p1587_p5 = scmp.lt.u32.totalorder %s1578_s12, %s1893_s26 }
  0x40   : > { %p1586_p4 = por %p1585_p2, %p1584_p0 }
  0x41   : > { %p1582_p10 = pneg %p1581_p8 }
  0x42   : > { %p1588_p7 = por %p1587_p5, %p1586_p4 }
  0x44   : > { %p1589_p9 = pnand %p1588_p7, %p1582_p10 }
  0x46   : > { %1592 = shalt.err (!%p1589_p9)
}
  0x47   : > { %s1593_s19 = scalar_lea.vmem %s360_s30, 128  ;;  %s1715_s27 = smov [#allocation5]  }
  0x48   : > { %p1594_p3 = scmp.ne.s32.totalorder %s360_s30, %s1593_s19  ;;  %s1598_s28 = sshll.u32 %s1715_s27, 4  ;;  %s1599_s28 = int_to_ptr.vmem [resolvable:$false] %s1598_s28 }
  0x49   : > { %s1600_s29 = scalar_lea.vmem %s1599_s28, 256  ;;  %p1601_p6 = scmp.lt.s32.totalorder %s360_s30, %s1599_s28 }
  0x4a   : > { %p1596_p12 = pnand %p1594_p3, %p1550_p1  ;;  %p1602_p11 = scmp.lt.s32.totalorder %s1600_s29, %s1593_s19 }
  0x4c   : > { %p1597_p8 = pneg %p1596_p12  ;;  %p1603_p0 = por %p1602_p11, %p1601_p6 }
  0x4e   : > { %p1604_p2 = pnand %p1603_p0, %p1597_p8 }
  0x50   : > { %1607 = shalt.err (!%p1604_p2)
}
  0x51   : > { %1499 = dma.hbm_to_vmem [thread:$0]  (!%p1848_p13), %s1893_s26, 128, %s360_s30, %s349_s22  }
  0x52   : > { %p2325_p10 = scmp.ne.s32.totalorder %s2324_s18, 0 }
  0x53   : > { %s1918_s12 = sand.u32 (!%p2325_p10), 1, %s1702_s14   ;;  %p2326_p6 = scmp.ne.s32.totalorder (!%p2325_p10), %s2318_s24, 0 }
  0x54   : > { %382 = sbr.rel (%p2325_p10) target bundleno = 641 (0x281), region = 56  ;;  %s1120_s20 = sshll.u32 (!%p2325_p10), %s1918_s12, 4 }
  0x55   : > { %s385_s15 = scalar_lea.sflag (!%p2325_p10), [#allocation3], %s1918_s12  ;;  %s1924_s23 = scalar_lea.vmem (!%p2325_p10), [#allocation2], %s1120_s20 }
  0x5b   : > { %1681 = dma.done.wait (%p2326_p6), %s385_s15, 256  }
  0x5c   : > { %1683 = vsyncadd (%p2326_p6), %s385_s15, 4294967040  ;;  %s1121_s26 = sshll.u32 %s1918_s12, 3  ;;  %s394_s21 = scalar_lea.sflag [#allocation6], %s1918_s12 }
  0x5d   : > { %s1934_s18 = scalar_lea.vmem [#allocation5], %s1121_s26 }
  0x5e   : > { %1685 = dma.done.wait (%p2326_p6), %s394_s21, 128  }
  0x5f   : > { %1687 = vsyncadd (%p2326_p6), %s394_s21, 4294967168  ;;  %v1716_v0 = vmov 0.0|0.0   ;;  %vm1717_vm0 = vmmov 0   ;;  %v1718_v1 = vmov 0.0   ;;  %v463_v2 = vld [vmem:[%s2300_s4] sm:$0xff]  ;;  %v464_v3 = vld [vmem:[%s2300_s4 + $0x8] sm:$0xff] }
  0x60   : > { %1389 = vmatprep.subr.bf16.mxu0 %v1716_v0  ;;  %1276 = vmatprep.mubr.msk.f32.mxu0 %vm1717_vm0, %v1718_v1  ;;  %v465_v4 = vld [vmem:[%s2300_s4 + $0x10] sm:$0xff]  ;;  %v1390_v5 = vpack.c.bf16 %v464_v3, %v463_v2  ;;  %v466_v6 = vld [vmem:[%s2300_s4 + $0x18] sm:$0xff]  ;;  %v467_v8 = vld [vmem:[%s2300_s4 + $0x20] sm:$0xff]  ;;  %vm551_vm1 = vcmask 64512   ;;  %p452_p13 = scmp.lt.s32.totalorder %s1799_s17, 1  ;;  %vm653_vm2 = vcmask 1040384  }
  0x61   : > { %v1393_v7 = vpack.c.bf16 %v466_v6, %v465_v4  ;;  %v468_v9 = vld [vmem:[%s2300_s4 + $0x28] sm:$0xff]  ;;  %v469_v11 = vld [vmem:[%s2300_s4 + $0x30] sm:$0xff]  ;;  %v470_v12 = vld [vmem:[%s2300_s4 + $0x38] sm:$0xff]  ;;  %s444_s28 = scalar_lea.vmem [#allocation7], %s1120_s20  ;;  %s1172_s21 = sshll.u32 %s1799_s17, 8 }
  0x62   : > { %1391 = vmatpush3.bf16.msra.mxu0 %v1390_v5  ;;  %v1396_v10 = vpack.c.bf16 %v468_v9, %v467_v8  ;;  %v1399_v13 = vpack.c.bf16 %v470_v12, %v469_v11  ;;  %v471_v14 = vld [vmem:[%s2300_s4 + $0x40] sm:$0xff]  ;;  %v472_v15 = vld [vmem:[%s2300_s4 + $0x48] sm:$0xff]  ;;  %v473_v17 = vld [vmem:[%s2300_s4 + $0x50] sm:$0xff]  ;;  %s2059_s19 = scalar_select %p452_p13, %s1799_s17, 1 }
  0x63   : > { %1392 = vmatprep.subr.bf16.mxu0 %v1716_v0  ;;  %v1402_v16 = vpack.c.bf16 %v472_v15, %v471_v14  ;;  %v474_v18 = vld [vmem:[%s2300_s4 + $0x58] sm:$0xff]  ;;  %v475_v20 = vld [vmem:[%s2300_s4 + $0x60] sm:$0xff]  ;;  %v476_v21 = vld [vmem:[%s2300_s4 + $0x68] sm:$0xff]  ;;  %s928_s20 = scalar_lea.sflag [#allocation4], %s1918_s12  ;;  %p2327_p11 = scmp.ne.s32.totalorder %s2319_s25, 0 }
  0x64   : > { %v1405_v19 = vpack.c.bf16 %v474_v18, %v473_v17  ;;  %v1408_v22 = vpack.c.bf16 %v476_v21, %v475_v20  ;;  %v477_v23 = vld [vmem:[%s2300_s4 + $0x70] sm:$0xff]  ;;  %v478_v24 = vld [vmem:[%s2300_s4 + $0x78] sm:$0xff]  ;;  %v1999_v26 = vld [vmem:[%s1934_s18] sm:$0xff]  ;;  %s1124_s15 = sshll.u32 %s2059_s19, 3  ;;  %s1719_s18 = smov [#allocation7]  }
  0x65   : > { %v1411_v25 = vpack.c.bf16 %v478_v24, %v477_v23  ;;  %v549_v27 = vld [vmem:[%s2302_s6] sm:$0xff]  ;;  %v656_v29 = vld [vmem:[%s2303_s7 + $0x8] sm:$0xff]  ;;  %v657_v31 = vld [vmem:[%s2303_s7 + $0x10] sm:$0xff]  ;;  %s459_s22 = scalar_lea.vmem %s2299_s3, %s1124_s15  ;;  %s455_s29 = scalar_lea.vmem %s2298_s2, %s1124_s15 }
  0x66   : > { %1394 = vmatpush3.bf16.msra.mxu0 %v1393_v7  ;;  %1281 = vmatprep.mubr.msk.f32.mxu1 %vm551_vm1, %v549_v27  ;;  %v655_v28 = vld [vmem:[%s2303_s7] sm:$0xff]  ;;  %v658_v32 = vld [vmem:[%s2303_s7 + $0x18] sm:$0xff]  ;;  %v660_v35 = vld [vmem:[%s2303_s7 + $0x28] sm:$0xff]  ;;  %s1612_s0 = sshll.u32 %s1719_s18, 4  ;;  %s1613_s0 = int_to_ptr.vmem [resolvable:$false] %s1612_s0 }
  0x67   : > { %1395 = vmatprep.subr.bf16.mxu0 %v1716_v0  ;;  %v1438_v30 = vpack.c.bf16 %v656_v29, %v655_v28  ;;  %v1441_v33 = vpack.c.bf16 %v658_v32, %v657_v31  ;;  %v659_v34 = vld [vmem:[%s2303_s7 + $0x20] sm:$0xff]  ;;  %v661_v37 = vld [vmem:[%s2303_s7 + $0x30] sm:$0xff]  ;;  %v662_v38 = vld [vmem:[%s2303_s7 + $0x38] sm:$0xff]  ;;  %s1614_s19 = scalar_lea.vmem %s1613_s0, 512 }
  0x68   : > { %v1444_v36 = vpack.c.bf16 %v660_v35, %v659_v34  ;;  %v1447_v39 = vpack.c.bf16 %v662_v38, %v661_v37  ;;  %v663_v40 = vld [vmem:[%s2303_s7 + $0x40] sm:$0xff]  ;;  %v664_v41 = vld [vmem:[%s2303_s7 + $0x48] sm:$0xff]  ;;  %v665_v43 = vld [vmem:[%s2303_s7 + $0x50] sm:$0xff] }
  0x69   : > { %v1450_v42 = vpack.c.bf16 %v664_v41, %v663_v40  ;;  %v666_v44 = vld [vmem:[%s2303_s7 + $0x58] sm:$0xff]  ;;  %v667_v46 = vld [vmem:[%s2303_s7 + $0x60] sm:$0xff]  ;;  %v668_v47 = vld [vmem:[%s2303_s7 + $0x68] sm:$0xff] }
  0x6a   : > { %1397 = vmatpush3.bf16.msra.mxu0 %v1396_v10  ;;  %v1453_v45 = vpack.c.bf16 %v666_v44, %v665_v43  ;;  %v1456_v48 = vpack.c.bf16 %v668_v47, %v667_v46  ;;  %v669_v49 = vld [vmem:[%s2303_s7 + $0x70] sm:$0xff]  ;;  %v670_v50 = vld [vmem:[%s2303_s7 + $0x78] sm:$0xff]  ;;  %v2074_v52 = vld [vmem:[%s459_s22] sm:$0xff]  ;;  %s2216_s22 = scalar_lea.hbm %s2305_s9, %s1172_s21 }
  0x6b   : > { %1398 = vmatprep.subr.bf16.mxu0 %v1716_v0  ;;  %v1459_v51 = vpack.c.bf16 %v670_v50, %v669_v49  ;;  %v651_v53 = vrot.slane %v2074_v52, 7  ;;  %vm1145_vm3 = vmneg %vm653_vm2  ;;  %v1129_v54 = vld [vmem:[%s2303_s7 + $0x80] sm:$0xff]  ;;  %v1130_v55 = vld [vmem:[%s2303_s7 + $0x88] sm:$0xff] }
  0x6c   : > { %v550_v57 = vld [vmem:[%s2302_s6 + $0x8] sm:$0xff]  ;;  %v1414_v58 = vpack.c.bf16 %v1130_v55, %v1129_v54  ;;  %v1131_v60 = vld [vmem:[%s2303_s7 + $0x90] sm:$0xff]  ;;  %v1132_v61 = vld [vmem:[%s2303_s7 + $0x98] sm:$0xff] }
  0x6d   : > { %v1417_v62 = vpack.c.bf16 %v1132_v61, %v1131_v60  ;;  %v1133_v63 = vld [vmem:[%s2303_s7 + $0xa0] sm:$0xff]  ;;  %v1134_v2 = vld [vmem:[%s2303_s7 + $0xa8] sm:$0xff]  ;;  %v1135_v4 = vld [vmem:[%s2303_s7 + $0xb0] sm:$0xff] }
  0x6e   : > { %1400 = vmatpush3.bf16.msra.mxu0 %v1399_v13  ;;  %v1420_v3 = vpack.c.bf16 %v1134_v2, %v1133_v63  ;;  %v1136_v5 = vld [vmem:[%s2303_s7 + $0xb8] sm:$0xff]  ;;  %v1137_v7 = vld [vmem:[%s2303_s7 + $0xc0] sm:$0xff]  ;;  %v1138_v8 = vld [vmem:[%s2303_s7 + $0xc8] sm:$0xff] }
  0x6f   : > { %1401 = vmatprep.subr.bf16.mxu0 %v1716_v0  ;;  %v1423_v6 = vpack.c.bf16 %v1136_v5, %v1135_v4  ;;  %v1426_v9 = vpack.c.bf16 %v1138_v8, %v1137_v7  ;;  %v1139_v10 = vld [vmem:[%s2303_s7 + $0xd0] sm:$0xff]  ;;  %v1140_v11 = vld [vmem:[%s2303_s7 + $0xd8] sm:$0xff]  ;;  %v1141_v13 = vld [vmem:[%s2303_s7 + $0xe0] sm:$0xff] }
  0x70   : > { %v1429_v12 = vpack.c.bf16 %v1140_v11, %v1139_v10  ;;  %v1142_v14 = vld [vmem:[%s2303_s7 + $0xe8] sm:$0xff]  ;;  %v1144_v17 = vld [vmem:[%s2303_s7 + $0xf8] sm:$0xff]  ;;  %v648_v21 = vld [vmem:[%s455_s29] sm:$0xff]  ;;  %s946_s29 = sshll.u32 %s444_s28, 4  ;;  %s2211_s29 = int_to_ptr.vmem [resolvable:$true] %s946_s29 }
  0x71   : > { %v1432_v15 = vpack.c.bf16 %v1142_v14, %v1141_v13  ;;  %v1148_v20 = vld [vmem:[%s2303_s7 + $0x108] sm:$0xff]  ;;  %v1149_v23 = vld [vmem:[%s2303_s7 + $0x110] sm:$0xff]  ;;  %v1150_v24 = vld [vmem:[%s2303_s7 + $0x118] sm:$0xff]  ;;  %s1608_s11 = scalar_lea.vmem %s2211_s29, 256  ;;  %p1615_p7 = scmp.lt.s32.totalorder %s2211_s29, %s1613_s0 }
  0x72   : > { %1403 = vmatpush3.bf16.msra.mxu0 %v1402_v16  ;;  %v1143_v16 = vld [vmem:[%s2303_s7 + $0xf0] sm:$0xff]  ;;  %v1151_v27 = vld [vmem:[%s2303_s7 + $0x120] sm:$0xff]  ;;  %v1152_v28 = vld [vmem:[%s2303_s7 + $0x128] sm:$0xff]  ;;  %p1609_p1 = scmp.ne.s32.totalorder %s2211_s29, %s1608_s11  ;;  %p1616_p9 = scmp.lt.s32.totalorder %s1614_s19, %s1608_s11 }
  0x73   : > { %1404 = vmatprep.subr.bf16.mxu0 %v1716_v0  ;;  %v1435_v18 = vpack.c.bf16 %v1144_v17, %v1143_v16  ;;  %v1468_v29 = vpack.c.bf16 %v1152_v28, %v1151_v27  ;;  %v1155_v32 = vld [vmem:[%s2303_s7 + $0x140] sm:$0xff]  ;;  %v1157_v35 = vld [vmem:[%s2303_s7 + $0x150] sm:$0xff]  ;;  %v461_v46 = vld [vmem:[%s1924_s23 + $0x8] sm:$0xff] }
  0x74   : > { %v1159_v38 = vld [vmem:[%s2303_s7 + $0x160] sm:$0xff]  ;;  %v1161_v41 = vld [vmem:[%s2303_s7 + $0x170] sm:$0xff]  ;;  %p1610_p4 = pnand %p1609_p1, %p2327_p11  ;;  %p1617_p3 = por %p1616_p9, %p1615_p7 }
  0x75   : > { %v460_v47 = vld [vmem:[%s1924_s23] sm:$0xff] }
  0x76   : > { %1406 = vmatpush3.bf16.msra.mxu0 %v1405_v19  ;;  %v1147_v19 = vld [vmem:[%s2303_s7 + $0x100] sm:$0xff]  ;;  %p1611_p5 = pneg %p1610_p4 }
  0x77   : > { %1407 = vmatprep.subr.bf16.mxu0 %v1716_v0  ;;  %v1128_v49 = vld [vmem:[%s2301_s5] ss:$0 sm:$0xff] }
  0x78   : > { %p1618_p12 = pnand %p1617_p3, %p1611_p5 }
  0x7a   : > { %1409 = vmatpush3.bf16.msra.mxu0 %v1408_v22  ;;  %v1462_v22 = vpack.c.bf16 %v1148_v20, %v1147_v19 }
  0x7b   : > { %1410 = vmatprep.subr.bf16.mxu0 %v1716_v0 }
  0x7e   : > { %1412 = vmatpush3.bf16.msra.mxu0 %v1411_v25  ;;  %v1465_v25 = vpack.c.bf16 %v1150_v24, %v1149_v23 }
  0x7f   : > { %1437 = vmatprep.subr.bf16.mxu0 %v1716_v0 }
  0x81   : > { %1277 = vmatmul.mubr.f32.vlgmr.msra.gmra.mrb[0].mxu0 %v1999_v26 }
  0x82   : > { %1351 = vmatprep.mubr.msk.f32.mxu0 %vm1717_vm0, %v1718_v1  ;;  %1439 = vmatpush3.bf16.msra.mxu0 %v1438_v30  ;;  %v1153_v30 = vld [vmem:[%s2303_s7 + $0x130] sm:$0xff] }
  0x83   : > { %1440 = vmatprep.subr.bf16.mxu0 %v1716_v0 }
  0x86   : > { %1442 = vmatpush3.bf16.msra.mxu0 %v1441_v33  ;;  %v1156_v33 = vld [vmem:[%s2303_s7 + $0x148] sm:$0xff] }
  0x87   : > { %1443 = vmatprep.subr.bf16.mxu0 %v1716_v0  ;;  %v1474_v34 = vpack.c.bf16 %v1156_v33, %v1155_v32 }
  0x8a   : > { %1445 = vmatpush3.bf16.msra.mxu0 %v1444_v36  ;;  %v1158_v36 = vld [vmem:[%s2303_s7 + $0x158] sm:$0xff] }
  0x8b   : > { %1446 = vmatprep.subr.bf16.mxu0 %v1716_v0  ;;  %v1477_v37 = vpack.c.bf16 %v1158_v36, %v1157_v35 }
  0x8e   : > { %1448 = vmatpush3.bf16.msra.mxu0 %v1447_v39  ;;  %v1160_v39 = vld [vmem:[%s2303_s7 + $0x168] sm:$0xff] }
  0x8f   : > { %1449 = vmatprep.subr.bf16.mxu0 %v1716_v0  ;;  %v1480_v40 = vpack.c.bf16 %v1160_v39, %v1159_v38 }
  0x92   : > { %1451 = vmatpush3.bf16.msra.mxu0 %v1450_v42  ;;  %v1162_v42 = vld [vmem:[%s2303_s7 + $0x178] sm:$0xff] }
  0x93   : > { %1452 = vmatprep.subr.bf16.mxu0 %v1716_v0  ;;  %v1483_v43 = vpack.c.bf16 %v1162_v42, %v1161_v41 }
  0x96   : > { %1454 = vmatpush3.bf16.msra.mxu0 %v1453_v45 }
  0x97   : > { %1455 = vmatprep.subr.bf16.mxu0 %v1716_v0 }
  0x9a   : > { %1457 = vmatpush3.bf16.msra.mxu0 %v1456_v48 }
  0x9b   : > { %1458 = vmatprep.subr.bf16.mxu0 %v1716_v0 }
  0x9e   : > { %1460 = vmatpush3.bf16.msra.mxu0 %v1459_v51 }
  0xa1   : > { %1352 = vmatmul.mubr.msk.f32.vlgmr.msra.gmra.mrb[2].mxu0 %vm1145_vm3, %v651_v53 }
 0x154   : > { %v545_v56 = vpop.f32.mrb[0].mxu0 }
 0x155   : > { %v1278_v59 = vpop.f32.mrb[1].mxu0  ;;  %1279 = vmatprep.subr.mxu1 %v545_v56 }
 0x156   : > { %1280 = vmatpush3.msra.mxu1 %v545_v56 }
 0x157   : > { %1282 = vmatmul.mubr.msk.f32.vlgmr.msra.gmra.mrb[0].mxu1 %vm551_vm1, %v550_v57  ;;  %1413 = vmatprep.subr.bf16.mxu1 %v1716_v0 }
 0x158   : > { %1415 = vmatpush3.bf16.msra.mxu1 %v1414_v58  ;;  %1316 = vmatprep.mubr.msk.f32.mxu1 %vm1717_vm0, %v1718_v1 }
 0x159   : > { %1416 = vmatprep.subr.bf16.mxu1 %v1716_v0 }
 0x15c   : > { %1418 = vmatpush3.bf16.msra.mxu1 %v1417_v62 }
 0x15d   : > { %1419 = vmatprep.subr.bf16.mxu1 %v1716_v0 }
 0x160   : > { %1421 = vmatpush3.bf16.msra.mxu1 %v1420_v3 }
 0x161   : > { %1422 = vmatprep.subr.bf16.mxu1 %v1716_v0 }
 0x164   : > { %1424 = vmatpush3.bf16.msra.mxu1 %v1423_v6 }
 0x165   : > { %1425 = vmatprep.subr.bf16.mxu1 %v1716_v0 }
 0x168   : > { %1427 = vmatpush3.bf16.msra.mxu1 %v1426_v9 }
 0x169   : > { %1428 = vmatprep.subr.bf16.mxu1 %v1716_v0 }
 0x16c   : > { %1430 = vmatpush3.bf16.msra.mxu1 %v1429_v12 }
 0x16d   : > { %1431 = vmatprep.subr.bf16.mxu1 %v1716_v0 }
 0x170   : > { %1433 = vmatpush3.bf16.msra.mxu1 %v1432_v15 }
 0x171   : > { %1434 = vmatprep.subr.bf16.mxu1 %v1716_v0 }
 0x174   : > { %1436 = vmatpush3.bf16.msra.mxu1 %v1435_v18  ;;  %v824_v44 = vpop.f32.mrb[2].mxu0 }
 0x175   : > { %1461 = vmatprep.subr.bf16.mxu1 %v1716_v0  ;;  %v1353_v45 = vpop.f32.mrb[3].mxu0 }
 0x177   : > { %1317 = vmatmul.mubr.f32.vlgmr.msra.gmra.mrb[2].mxu1 %v648_v21 }
 0x178   : > { %1463 = vmatpush3.bf16.msra.mxu1 %v1462_v22  ;;  %1386 = vmatprep.mubr.msk.f32.mxu1 %vm1717_vm0, %v1718_v1  ;;  %v1154_v1 = vld [vmem:[%s2303_s7 + $0x138] sm:$0xff] }
 0x179   : > { %1464 = vmatprep.subr.bf16.mxu1 %v1716_v0  ;;  %v1471_v31 = vpack.c.bf16 %v1154_v1, %v1153_v30 }
 0x17c   : > { %1466 = vmatpush3.bf16.msra.mxu1 %v1465_v25 }
 0x17d   : > { %1467 = vmatprep.subr.bf16.mxu1 %v1716_v0 }
 0x180   : > { %1469 = vmatpush3.bf16.msra.mxu1 %v1468_v29 }
 0x181   : > { %1470 = vmatprep.subr.bf16.mxu1 %v1716_v0 }
 0x184   : > { %1472 = vmatpush3.bf16.msra.mxu1 %v1471_v31 }
 0x185   : > { %1473 = vmatprep.subr.bf16.mxu1 %v1716_v0 }
 0x188   : > { %1475 = vmatpush3.bf16.msra.mxu1 %v1474_v34 }
 0x189   : > { %1476 = vmatprep.subr.bf16.mxu1 %v1716_v0 }
 0x18c   : > { %1478 = vmatpush3.bf16.msra.mxu1 %v1477_v37 }
 0x18d   : > { %1479 = vmatprep.subr.bf16.mxu1 %v1716_v0 }
 0x190   : > { %1481 = vmatpush3.bf16.msra.mxu1 %v1480_v40 }
 0x191   : > { %1482 = vmatprep.subr.bf16.mxu1 %v1716_v0 }
 0x194   : > { %1484 = vmatpush3.bf16.msra.mxu1 %v1483_v43 }
 0x197   : > { %1387 = vmatmul.mubr.f32.vlgmr.msra.gmra.mrb[4].mxu1 %v2074_v52 }
 0x22a   : > { %v1283_v48 = vpop.f32.mrb[0].mxu1 }
 0x22b   : > { %v634_v50 = vadd.f32 %v1283_v48, %v461_v46  ;;  %v624_v51 = vpop.f32.mrb[1].mxu1 }
 0x22c   : > { %v633_v0 = vadd.f32 %v624_v51, %v460_v47 }
 0x22d   : > { %v643_v53 = vadd.f32 %v1128_v49, %v634_v50 }
 0x22e   : > { %v642_v52 = vadd.f32 %v1128_v49, %v633_v0 }
 0x22f   : > { %v645_v54 = vmax.f32 %v643_v53, 0.0 }
 0x230   : > { %v644_v55 = vmax.f32 %v642_v52, 0.0 }
 0x231   : > { %647 = vst [vmem:[%s444_s28 + $0x8] sm:$0xff] %v645_v54 }
 0x232   : > { %646 = vst [vmem:[%s444_s28] sm:$0xff] %v644_v55 }
 0x233   : > { %1621 = shalt.err (!%p1618_p12)
}
 0x234   : > { %s1622_s27 = scalar_lea.hbm %s2216_s22, 256  ;;  %s1626_s28 = scalar_lea.hbm %s2305_s9, 512 }
 0x235   : > { %p1623_p8 = scmp.ne.s32.totalorder %s2216_s22, %s1622_s27  ;;  %p1627_p10 = scmp.lt.u32.totalorder %s2216_s22, %s2305_s9 }
 0x236   : > { %p1628_p6 = scmp.lt.u32.totalorder %s1626_s28, %s1622_s27  ;;  %p1630_p1 = scmp.lt.u32.totalorder %s1622_s27, %s2216_s22 }
 0x237   : > { %p1624_p0 = pnand %p1623_p8, %p2327_p11 }
 0x238   : > { %p1629_p13 = por %p1628_p6, %p1627_p10 }
 0x239   : > { %p1625_p2 = pneg %p1624_p0 }
 0x23a   : > { %p1631_p4 = por %p1630_p1, %p1629_p13 }
 0x23c   : > { %p1632_p5 = pnand %p1631_p4, %p1625_p2 }
 0x23e   : > { %1635 = shalt.err (!%p1632_p5)
}
 0x23f   : > { %s1720_s30 = smov 128   ;;  %s1721_s11 = smov 8   ;;  %v1163_v62 = vld [vmem:[%s2304_s8] ss:$0 sm:$0xff] }
 0x240   : > { %1489 = dma.vmem_to_hbm [thread:$0]  (%p2327_p11), %s2211_s29, 256, %s2216_s22, %s928_s20, %s1720_s30, %s1720_s30, %s1721_s11  }
 0x241   : > { %s1168_s19 = sshll.u32 %s1799_s17, 7  ;;  %s451_s27 = scalar_lea.vmem [#allocation8], %s1121_s26 }
 0x242   : > { %s962_s15 = sshll.u32 %s451_s27, 4  ;;  %s2252_s20 = scalar_lea.hbm %s2306_s10, %s1168_s19  ;;  %s2254_s15 = int_to_ptr.vmem [resolvable:$true] %s962_s15 }
 0x243   : > { %s933_s24 = scalar_lea.sflag [#allocation9], %s1918_s12  ;;  %s1636_s28 = scalar_lea.vmem %s2254_s15, 128 }
 0x244   : > { %p1637_p7 = scmp.ne.s32.totalorder %s2254_s15, %s1636_s28  ;;  %s1722_s17 = smov [#allocation8]  }
 0x245   : > { %s1640_s26 = sshll.u32 %s1722_s17, 4  ;;  %s1641_s26 = int_to_ptr.vmem [resolvable:$false] %s1640_s26 }
 0x246   : > { %p1638_p9 = pnand %p1637_p7, %p2327_p11  ;;  %s1642_s21 = scalar_lea.vmem %s1641_s26, 256 }
 0x247   : > { %p1643_p12 = scmp.lt.s32.totalorder %s2254_s15, %s1641_s26  ;;  %p1644_p8 = scmp.lt.s32.totalorder %s1642_s21, %s1636_s28 }
 0x248   : > { %p1639_p3 = pneg %p1638_p9 }
 0x249   : > { %p1645_p0 = por %p1644_p8, %p1643_p12 }
 0x24a   : > { %v754_v56 = vpop.f32.mrb[2].mxu1 }
 0x24b   : > { %v1318_v57 = vpop.f32.mrb[3].mxu1  ;;  %v825_v58 = vadd.f32 %v824_v44, %v754_v56  ;;  %p1646_p2 = pnand %p1645_p0, %p1639_p3 }
 0x26a   : > { %v911_v59 = vpop.f32.mrb[4].mxu1 }
 0x26b   : > { %v915_v60 = vadd.f32 %v911_v59, %v825_v58  ;;  %v1388_v61 = vpop.f32.mrb[5].mxu1 }
 0x26d   : > { %v916_v63 = vadd.f32 %v915_v60, %v1999_v26 }
 0x26f   : > { %v924_v2 = vadd.f32 %v1163_v62, %v916_v63 }
 0x271   : > { %v925_v3 = vmax.f32 %v924_v2, 0.0 }
 0x273   : > { %926 = vst [vmem:[%s451_s27] sm:$0xff] %v925_v3 }
 0x274   : > { %1649 = shalt.err (!%p1646_p2)
}
 0x275   : > { %s1650_s12 = scalar_lea.hbm %s2252_s20, 128  ;;  %s1654_s11 = scalar_lea.hbm %s2306_s10, 256 }
 0x276   : > { %p1651_p10 = scmp.ne.s32.totalorder %s2252_s20, %s1650_s12  ;;  %p1655_p1 = scmp.lt.u32.totalorder %s2252_s20, %s2306_s10 }
 0x277   : > { %p1656_p4 = scmp.lt.u32.totalorder %s1654_s11, %s1650_s12  ;;  %p1658_p7 = scmp.lt.u32.totalorder %s1650_s12, %s2252_s20 }
 0x278   : > { %p1652_p6 = pnand %p1651_p10, %p2327_p11 }
 0x279   : > { %p1657_p5 = por %p1656_p4, %p1655_p1 }
 0x27a   : > { %p1653_p13 = pneg %p1652_p6 }
 0x27b   : > { %p1659_p9 = por %p1658_p7, %p1657_p5 }
 0x27d   : > { %p1660_p3 = pnand %p1659_p9, %p1653_p13 }
 0x27f   : > { %1663 = shalt.err (!%p1660_p3)
}
 0x280   : > { %1490 = dma.vmem_to_hbm [thread:$0]  (%p2327_p11), %s2254_s15, 128, %s2252_s20, %s933_s24  }
 0x281 PF: > { %s2328_s19 = sld [smem:[#allocation17_spill]]  ;;  %s974_s27 = sand.u32 1, %s1698_s13  }
 0x282   : > { %p2330_p8 = scmp.ge.s32.totalorder %s1710_s16, 2  ;;  %s975_s29 = scalar_lea.sflag [#allocation4], %s974_s27 }
 0x287   : > { %p2329_p12 = scmp.ne.s32.totalorder %s2328_s19, 0 }
 0x289   : > { %p1501_p0 = pnand %p2330_p8, %p2329_p12 }
 0x28b   : > { %1689 = dma.done.wait (!%p1501_p0), %s975_s29, 256  }
 0x28c   : > { %1691 = vsyncadd (!%p1501_p0), %s975_s29, 4294967040  ;;  %s984_s22 = scalar_lea.sflag [#allocation9], %s974_s27 }
 0x28d   : > { %1693 = dma.done.wait (!%p1501_p0), %s984_s22, 128  }
 0x28e   : > { %1695 = vsyncadd (!%p1501_p0), %s984_s22, 4294967168  ;;  %s2331_s16 = sld [smem:[#allocation15_spill]]  ;;  %s2332_s25 = sld [smem:[#allocation14_spill]] }
 0x28f   : > { %s2333_s15 = sld [smem:[#allocation16_spill]]  ;;  %s2334_s13 = smov %s1702_s14 }
 0x294   : > { %p30_p11 = scmp.ge.s32.totalorder %s2331_s16, 4   ;;  %s2335_s14 = smov %s2332_s25 }
 0x296   :  { %32 = sbr.rel (!%p30_p11) target bundleno = 11 (0xb), region = 139 }
 0x29d   :  { %989 = vsyncpa [#allocation3], 1 }
 0x29e   :  { %991 = vsyncpa [#allocation3 + $0x1], 1 }
 0x29f   :  { %992 = vsyncpa [#allocation6], 1 }
 0x2a0   :  { %994 = vsyncpa [#allocation6 + $0x1], 1 }
 0x2a1   :  { %995 = vsyncpa [#allocation4], 1 }
 0x2a2   :  { %997 = vsyncpa [#allocation4 + $0x1], 1 }
 0x2a3   :  { %998 = vsyncpa [#allocation9], 1 }
 0x2a4   :  { %1000 = vsyncpa [#allocation9 + $0x1], 1 }

// kernel: hr_module_forward.2
= control target key start
LH: loop header
LB: loop body
LE: loop exit
PB: predicated region body
PF: predicated region fallthrough
CT: control target
= control target key end

     0   :  { %13 = vsyncpa [#allocation3], 0  ;;  %s3401_s0 = inlined_call_operand.hbm [shape: f32[2,16,128], index: 0, kind: input, shape index: {}]   ;;  %s3402_s1 = inlined_call_operand.vmem [shape: f32[2,8,128], index: 1, kind: input, shape index: {}]   ;;  %s3403_s2 = inlined_call_operand.hbm [shape: f32[6,128,128], index: 2, kind: input, shape index: {}]   ;;  %s3404_s3 = inlined_call_operand.vmem [shape: f32[2,128], index: 3, kind: input, shape index: {}]   ;;  %s3405_s4 = inlined_call_operand.hbm [shape: f32[6,128,128], index: 4, kind: input, shape index: {}]   ;;  %s3406_s5 = inlined_call_operand.vmem [shape: f32[2,128], index: 5, kind: input, shape index: {}]   ;;  %s3407_s6 = inlined_call_operand.vmem [shape: f32[2,16,128], index: 6, kind: output, shape index: {0}]   ;;  %s3408_s7 = inlined_call_operand.hbm [shape: f32[2,8,128], index: 7, kind: output, shape index: {1}]  }
   0x1   :  { %15 = vsyncpa [#allocation3 + $0x1], 0 }
   0x2   :  { %16 = vsyncpa [#allocation6], 0 }
   0x3   :  { %17 = vsyncpa [#allocation4], 0 }
   0x4   :  { %19 = vsyncpa [#allocation4 + $0x1], 0  ;;  %s2997_s24 = smov 0   ;;  %s2999_s25 = smov 0  }
   0x5   :  { %s3001_s26 = smov 0   ;;  %s3003_s27 = smov 0  }
   0x6 LB: > { %s3018_s28 = sadd.s32 4294967295, %s2946_s27   ;;  %s1708_s29 = sadd.s32 4294967294, %s2946_s27   ;;  %s2946_s27 = sphi %s3003_s27, %s3432_s27   ;;  %s2942_s26 = sphi %s3001_s26, %s3431_s26   ;;  %s2938_s25 = sphi %s2999_s25, %s3430_s25   ;;  %s2934_s24 = sphi %s2997_s24, %s3429_s24  }
   0x7   : > { %p45_p0 = scmp.ne.s32.totalorder %s2938_s25, %s2934_s24  ;;  %p3409_p1 = scmp.eq.s32.totalorder %s3018_s28, 0 }
   0x8   : > { %p211_p3 = scmp.eq.s32.totalorder %s1708_s29, 1  ;;  %p1709_p5 = scmp.ge.s32.totalorder %s2946_s27, 1 }
   0x9   : > { %p3027_p4 = por %p3409_p1, %p45_p0  ;;  %p218_p7 = scmp.lt.s32.totalorder %s2946_s27, 3 }
   0xa   : > { %p3032_p6 = por %p211_p3, %p45_p0  ;;  %s2948_s10 = smov [#allocation5]  }
   0xb   : > { %s3413_s30 = scalar_select %p3027_p4, 1, 0 }
   0xc   : > { %s3414_s8 = scalar_select %p3032_p6, 1, 0 }
   0xd   : > { %p3037_p8 = pnand %p1709_p5, %p218_p7  ;;  %s230_s11 = sshll.u32 %s2948_s10, 4  ;;  %s3041_s11 = int_to_ptr.vmem [resolvable:$true] %s230_s11 }
   0xe   : > { %s2949_s13 = smov [#allocation7]   ;;  %s2790_s17 = scalar_lea.hbm %s3403_s2, 12288 }
   0xf   : > { %p2728_p9 = pneg %p3037_p8  ;;  %s246_s14 = sshll.u32 %s2949_s13, 4  ;;  %s3052_s14 = int_to_ptr.vmem [resolvable:$true] %s246_s14 }
  0x10   : > { %p2791_p12 = scmp.ne.s32.totalorder %s3403_s2, %s2790_s17  ;;  %p2797_p5 = scmp.lt.u32.totalorder %s2790_s17, %s3403_s2 }
  0x11   : > { %p3048_p11 = pnand %p2728_p9, %p3409_p1 }
  0x13   : > { %p2792_p13 = pneg %p3048_p11 }
  0x15   : > { %p2793_p0 = pnand %p2792_p13, %p2791_p12 }
  0x17   : > { %p2794_p3 = pneg %p2793_p0 }
  0x19   : > { %p2799_p7 = pnand %p2797_p5, %p2794_p3 }
  0x1b   : > { %2802 = shalt.err (!%p2799_p7)
}
  0x1c   : > { %s2803_s22 = scalar_lea.vmem %s3041_s11, 12288  ;;  %p2811_p2 = scmp.lt.s32.totalorder %s3041_s11, %s3041_s11 }
  0x1d   : > { %p2804_p9 = scmp.ne.s32.totalorder %s3041_s11, %s2803_s22  ;;  %p2812_p12 = scmp.lt.s32.totalorder %s2803_s22, %s2803_s22 }
  0x1f   : > { %p2806_p10 = pnand %p2804_p9, %p2792_p13  ;;  %p2813_p0 = por %p2812_p12, %p2811_p2 }
  0x21   : > { %p2807_p1 = pneg %p2806_p10 }
  0x23   : > { %p2814_p6 = pnand %p2813_p0, %p2807_p1 }
  0x25   : > { %2817 = shalt.err (!%p2814_p6)
}
  0x26   : > { %s3410_s23 = smov 128   ;;  %s2951_s29 = smov 8  }
  0x27   : > { %2731 = dma.hbm_to_vmem [thread:$0]  (!%p3048_p11), %s3403_s2, 12288, %s3041_s11, [#allocation6], %s3410_s23, %s3410_s23, %s2951_s29  }
  0x28   : > { %s2818_s17 = scalar_lea.hbm %s3405_s4, 12288 }
  0x29   : > { %p2819_p1 = scmp.ne.s32.totalorder %s3405_s4, %s2818_s17  ;;  %p2825_p10 = scmp.lt.u32.totalorder %s2818_s17, %s3405_s4 }
  0x2b   : > { %p2821_p2 = pnand %p2819_p1, %p2792_p13 }
  0x2d   : > { %p2822_p6 = pneg %p2821_p2 }
  0x2f   : > { %p2827_p3 = pnand %p2825_p10, %p2822_p6 }
  0x31   : > { %2830 = shalt.err (!%p2827_p3)
}
  0x32   : > { %s2831_s11 = scalar_lea.vmem %s3052_s14, 12288  ;;  %p2839_p12 = scmp.lt.s32.totalorder %s3052_s14, %s3052_s14 }
  0x33   : > { %p2832_p5 = scmp.ne.s32.totalorder %s3052_s14, %s2831_s11  ;;  %p2840_p0 = scmp.lt.s32.totalorder %s2831_s11, %s2831_s11 }
  0x35   : > { %p2834_p7 = pnand %p2832_p5, %p2792_p13  ;;  %p2841_p1 = por %p2840_p0, %p2839_p12 }
  0x37   : > { %p2835_p9 = pneg %p2834_p7 }
  0x39   : > { %p2842_p2 = pnand %p2841_p1, %p2835_p9 }
  0x3b   : > { %2845 = shalt.err (!%p2842_p2)
}
  0x3c   : > { %2734 = dma.hbm_to_vmem [thread:$0]  (!%p3048_p11), %s3405_s4, 12288, %s3052_s14, [#allocation6], %s3410_s23, %s3410_s23, %s2951_s29  }
  0x3d   : > { %s3113_s12 = sadd.s32 1, %s2946_s27   ;;  %s32_s13 = sadd.s32 1, %s2942_s26 }
  0x3e   : > { %s29_s15 = ssub.s32 %s2946_s27, %s3113_s12  ;;  %p39_p13 = scmp.ne.s32.totalorder %s2942_s26, %s2938_s25 }
  0x3f   : > { %p30_p6 = scmp.eq.s32.totalorder %s29_s15, 0  ;;  %p40_p10 = scmp.eq.s32.totalorder %s2946_s27, 0 }
  0x40   : > { %p3417_p3 = scmp.eq.s32.totalorder %s3018_s28, 1  ;;  %p2745_p7 = scmp.lt.s32.totalorder %s2946_s27, 2 }
  0x41   : > { %s3129_s17 = scalar_select %p30_p6, %s2942_s26, %s32_s13  }
  0x42   : > { %p3123_p5 = por %p3417_p3, %p39_p13  ;;  %p41_p9 = por %p40_p10, %p39_p13 }
  0x43   : > { %s263_s18 = sand.u32 1, %s2942_s26   ;;  %s1740_s14 = sshll.u32 %s2946_s27, 8 }
  0x44   : > { %s3418_s16 = scalar_select %p3123_p5, 1, 0 }
  0x45   : > { %s1713_s19 = sshll.u32 %s263_s18, 4  ;;  %s3136_s11 = scalar_lea.hbm %s3401_s0, %s1740_s14 }
  0x46   : > { %s267_s22 = scalar_lea.vmem [#allocation2], %s1713_s19  ;;  %p3140_p11 = pnand %p2745_p7, %p41_p9 }
  0x47   : > { %s274_s10 = sshll.u32 %s267_s22, 4  ;;  %s3144_s15 = scalar_lea.sflag [#allocation3], %s263_s18  ;;  %s3138_s10 = int_to_ptr.vmem [resolvable:$true] %s274_s10 }
  0x48   : > { %s2846_s23 = scalar_lea.hbm %s3136_s11, 256  ;;  %p2848_p0 = pneg %p3140_p11 }
  0x49   : > { %p2847_p12 = scmp.ne.s32.totalorder %s3136_s11, %s2846_s23  ;;  %s2851_s20 = scalar_lea.hbm %s3401_s0, 512 }
  0x4a   : > { %p2852_p13 = scmp.lt.u32.totalorder %s3136_s11, %s3401_s0  ;;  %p2853_p6 = scmp.lt.u32.totalorder %s2851_s20, %s2846_s23 }
  0x4b   : > { %p2849_p1 = pnand %p2848_p0, %p2847_p12  ;;  %p2855_p3 = scmp.lt.u32.totalorder %s2846_s23, %s3136_s11 }
  0x4c   : > { %p2854_p10 = por %p2853_p6, %p2852_p13 }
  0x4d   : > { %p2850_p2 = pneg %p2849_p1 }
  0x4e   : > { %p2856_p7 = por %p2855_p3, %p2854_p10 }
  0x50   : > { %p2857_p9 = pnand %p2856_p7, %p2850_p2 }
  0x52   : > { %2860 = shalt.err (!%p2857_p9)
}
  0x53   : > { %s2861_s18 = scalar_lea.vmem %s3138_s10, 256  ;;  %s2952_s19 = smov [#allocation2]  }
  0x54   : > { %p2862_p12 = scmp.ne.s32.totalorder %s3138_s10, %s2861_s18  ;;  %s2866_s14 = sshll.u32 %s2952_s19, 4  ;;  %s2867_s14 = int_to_ptr.vmem [resolvable:$false] %s2866_s14 }
  0x55   : > { %s2868_s21 = scalar_lea.vmem %s2867_s14, 512  ;;  %p2869_p4 = scmp.lt.s32.totalorder %s3138_s10, %s2867_s14 }
  0x56   : > { %p2864_p1 = pnand %p2862_p12, %p2848_p0  ;;  %p2870_p13 = scmp.lt.s32.totalorder %s2868_s21, %s2861_s18 }
  0x58   : > { %p2865_p5 = pneg %p2864_p1  ;;  %p2871_p6 = por %p2870_p13, %p2869_p4 }
  0x5a   : > { %p2872_p10 = pnand %p2871_p6, %p2865_p5 }
  0x5c   : > { %2875 = shalt.err (!%p2872_p10)
}
  0x5d   : > { %s3420_s23 = smov 128   ;;  %293 = sbr.rel (%p3037_p8) target bundleno = 1015 (0x3f7), region = 44 }
  0x5e   : > { %2738 = dma.hbm_to_vmem [thread:$0]  (!%p3140_p11), %s3136_s11, 256, %s3138_s10, %s3144_s15, %s3420_s23, %s3420_s23, %s2951_s29  }
  0x5f   : > { %s3178_s20 = sand.u32 (!%p3037_p8), 1, %s2938_s25   ;;  %p3421_p4 = scmp.ne.s32.totalorder (!%p3037_p8), %s3413_s30, 0 }
  0x60   : > { %s1717_s22 = sshll.u32 (!%p3037_p8), %s3178_s20, 4  ;;  %s296_s18 = scalar_lea.sflag (!%p3037_p8), [#allocation3], %s3178_s20 }
  0x61   : > { %s3182_s19 = scalar_lea.vmem (!%p3037_p8), [#allocation2], %s1717_s22 }
  0x64   : > { %2921 = dma.done.wait (%p3421_p4), %s296_s18, 256  }
  0x65   : > { %2923 = vsyncadd (%p3421_p4), %s296_s18, 4294967040  ;;  %p3422_p5 = scmp.eq.s32.totalorder %s3018_s28, 0 }
  0x67   : > { %2925 = dma.done.wait (%p3422_p5), [#allocation6], 24576   ;;  %p3423_p8 = pmov %p3422_p5 }
  0x68   : > { %v386_v0 = vld [vmem:[#allocation5 + $0x80] sm:$0xff]  ;;  %v387_v1 = vld [vmem:[#allocation5 + $0x88] sm:$0xff]  ;;  %v388_v2 = vld [vmem:[#allocation5 + $0x90] sm:$0xff]  ;;  %vm360_vm0 = vcmask 1040384   ;;  %vm404_vm1 = vcmask 1046528   ;;  %vm579_vm3 = vcmask 1045504  }
  0x69   : > { %2927 = vsyncadd (%p3423_p8), [#allocation6], 4294942720  ;;  %v2372_v3 = vpack.c.bf16 %v387_v1, %v386_v0  ;;  %v389_v4 = vld [vmem:[#allocation5 + $0x98] sm:$0xff]  ;;  %v390_v6 = vld [vmem:[#allocation5 + $0xa0] sm:$0xff]  ;;  %p347_p11 = scmp.lt.s32.totalorder %s3018_s28, 1  ;;  %vm2954_vm4 = vmmov 0  }
  0x6a   : > { %v2376_v5 = vpack.c.bf16 %v389_v4, %v388_v2  ;;  %v391_v7 = vld [vmem:[#allocation5 + $0xa8] sm:$0xff]  ;;  %v356_v9 = vld [vmem:[%s3182_s19] sm:$0xff]  ;;  %v393_v12 = vld [vmem:[#allocation5 + $0xb8] sm:$0xff]  ;;  %s1737_s13 = sshll.u32 %s3018_s28, 7  ;;  %s1566_s18 = scalar_lea.sflag [#allocation4], %s3178_s20 }
  0x6b   : > { %2373 = vmatprep.subr.bf16.mxu0 %v2372_v3  ;;  %v2380_v8 = vpack.c.bf16 %v391_v7, %v390_v6  ;;  %v357_v10 = vld [vmem:[%s3182_s19 + $0x8] sm:$0xff]  ;;  %v392_v11 = vld [vmem:[#allocation5 + $0xb0] sm:$0xff]  ;;  %v3194_v13 = vrot.slane %v356_v9, 7  ;;  %v394_v20 = vld [vmem:[#allocation5 + $0xc0] sm:$0xff]  ;;  %s3238_s30 = scalar_select %p347_p11, %s3018_s28, 1 }
  0x6c   : > { %2375 = vmatpush3.bf16.msra.mxu0 %v2372_v3  ;;  %v362_v14 = vrot.slane %v357_v10, 7  ;;  %v2384_v17 = vpack.c.bf16 %v393_v12, %v392_v11  ;;  %v395_v21 = vld [vmem:[#allocation5 + $0xc8] sm:$0xff]  ;;  %v396_v24 = vld [vmem:[#allocation5 + $0xd0] sm:$0xff]  ;;  %v397_v25 = vld [vmem:[#allocation5 + $0xd8] sm:$0xff]  ;;  %s3357_s22 = scalar_lea.hbm %s3408_s7, %s1737_s13  ;;  %p3426_p2 = scmp.ne.s32.totalorder %s3418_s16, 0 }
  0x6d   : > { %2377 = vmatprep.subr.bf16.mxu0 %v2376_v5  ;;  %v3202_v16 = vsel %vm360_vm0, 0.0, %v3194_v13  ;;  %v2388_v23 = vpack.c.bf16 %v395_v21, %v394_v20  ;;  %v701_v26 = vld [vmem:[#allocation5 + $0x200] sm:$0xff]  ;;  %v2392_v27 = vpack.c.bf16 %v397_v25, %v396_v24  ;;  %v702_v28 = vld [vmem:[#allocation5 + $0x208] sm:$0xff]  ;;  %v703_v29 = vld [vmem:[#allocation5 + $0x210] sm:$0xff]  ;;  %s1721_s9 = sshll.u32 %s3238_s30, 3  ;;  %s1741_s23 = sshll.u32 %s3238_s30, 4 }
  0x6e   : > { %v3198_v15 = vsel %vm360_vm0, %v3194_v13, %v362_v14  ;;  %v405_v18 = vrot.slane %v3202_v16, 1  ;;  %v704_v30 = vld [vmem:[#allocation5 + $0x218] sm:$0xff]  ;;  %v398_v31 = vld [vmem:[#allocation5 + $0xe0] sm:$0xff]  ;;  %v399_v32 = vld [vmem:[#allocation5 + $0xe8] sm:$0xff]  ;;  %v2468_v33 = vpack.c.bf16 %v702_v28, %v701_v26  ;;  %v3208_v44 = vsel %vm360_vm0, %v362_v14, 0.0  ;;  %s350_s10 = scalar_lea.vmem %s3402_s1, %s1721_s9  ;;  %s355_s9 = scalar_lea.vmem %s3407_s6, %s1741_s23 }
  0x6f   : > { %v406_v19 = vrot.slane %v3198_v15, 1  ;;  %v2472_v34 = vpack.c.bf16 %v704_v30, %v703_v29  ;;  %v705_v35 = vld [vmem:[#allocation5 + $0x220] sm:$0xff]  ;;  %v706_v36 = vld [vmem:[#allocation5 + $0x228] sm:$0xff]  ;;  %v2396_v37 = vpack.c.bf16 %v399_v32, %v398_v31  ;;  %v400_v38 = vld [vmem:[#allocation5 + $0xf0] sm:$0xff]  ;;  %v408_v50 = vrot.slane %v3208_v44, 1  ;;  %s2956_s28 = smov [#allocation8]  }
  0x70   : > { %2379 = vmatpush3.bf16.msra.mxu0 %v2376_v5  ;;  %2469 = vmatprep.subr.bf16.mxu1 %v2468_v33  ;;  %v401_v39 = vld [vmem:[#allocation5 + $0xf8] sm:$0xff]  ;;  %v2476_v40 = vpack.c.bf16 %v706_v36, %v705_v35  ;;  %v707_v41 = vld [vmem:[#allocation5 + $0x230] sm:$0xff]  ;;  %v369_v45 = vld [vmem:[#allocation5] sm:$0xff]  ;;  %s2880_s30 = sshll.u32 %s2956_s28, 4  ;;  %s2881_s30 = int_to_ptr.vmem [resolvable:$false] %s2880_s30 }
  0x71   : > { %2381 = vmatprep.subr.bf16.mxu0 %v2380_v8  ;;  %v407_v22 = vsel %vm404_vm1, %v405_v18, %v406_v19  ;;  %2471 = vmatpush3.bf16.msra.mxu1 %v2468_v33  ;;  %v708_v42 = vld [vmem:[#allocation5 + $0x238] sm:$0xff]  ;;  %v2400_v43 = vpack.c.bf16 %v401_v39, %v400_v38  ;;  %v370_v46 = vld [vmem:[#allocation5 + $0x8] sm:$0xff]  ;;  %v709_v48 = vld [vmem:[#allocation5 + $0x240] sm:$0xff]  ;;  %v409_v55 = vsel %vm404_vm1, %v406_v19, %v408_v50  ;;  %v581_v18 = vrot.slane %v3198_v15, 2  ;;  %s2882_s29 = scalar_lea.vmem %s2881_s30, 256 }
  0x72   : > { %1984 = vmatprep.mubr.f32.mxu0 %v407_v22  ;;  %2473 = vmatprep.subr.bf16.mxu1 %v2472_v34  ;;  %v2480_v47 = vpack.c.bf16 %v708_v42, %v707_v41  ;;  %v710_v49 = vld [vmem:[#allocation5 + $0x248] sm:$0xff]  ;;  %v2404_v51 = vpack.c.bf16 %v370_v46, %v369_v45  ;;  %v371_v52 = vld [vmem:[#allocation5 + $0x10] sm:$0xff]  ;;  %v372_v53 = vld [vmem:[#allocation5 + $0x18] sm:$0xff]  ;;  %v583_v39 = vrot.slane %v3208_v44, 2 }
  0x73   : > { %v2484_v54 = vpack.c.bf16 %v710_v49, %v709_v48  ;;  %v2408_v56 = vpack.c.bf16 %v372_v53, %v371_v52  ;;  %vm3213_vm2 = vmneg %vm360_vm0  ;;  %v373_v58 = vld [vmem:[#allocation5 + $0x20] sm:$0xff]  ;;  %v374_v59 = vld [vmem:[#allocation5 + $0x28] sm:$0xff] }
  0x74   : > { %2383 = vmatpush3.bf16.msra.mxu0 %v2380_v8  ;;  %v2412_v60 = vpack.c.bf16 %v374_v59, %v373_v58  ;;  %v375_v61 = vld [vmem:[#allocation5 + $0x30] sm:$0xff]  ;;  %v376_v62 = vld [vmem:[#allocation5 + $0x38] sm:$0xff]  ;;  %v377_v0 = vld [vmem:[#allocation5 + $0x40] sm:$0xff] }
  0x75   : > { %2385 = vmatprep.subr.bf16.mxu0 %v2384_v17  ;;  %2475 = vmatpush3.bf16.msra.mxu1 %v2472_v34  ;;  %v2416_v63 = vpack.c.bf16 %v376_v62, %v375_v61  ;;  %v378_v1 = vld [vmem:[#allocation5 + $0x48] sm:$0xff]  ;;  %v379_v3 = vld [vmem:[#allocation5 + $0x50] sm:$0xff]  ;;  %v380_v4 = vld [vmem:[#allocation5 + $0x58] sm:$0xff] }
  0x76   : > { %2477 = vmatprep.subr.bf16.mxu1 %v2476_v40  ;;  %v2420_v2 = vpack.c.bf16 %v378_v1, %v377_v0  ;;  %v2424_v5 = vpack.c.bf16 %v380_v4, %v379_v3  ;;  %v381_v6 = vld [vmem:[#allocation5 + $0x60] sm:$0xff]  ;;  %v382_v7 = vld [vmem:[#allocation5 + $0x68] sm:$0xff]  ;;  %v383_v9 = vld [vmem:[#allocation5 + $0x70] sm:$0xff] }
  0x77   : > { %v2428_v8 = vpack.c.bf16 %v382_v7, %v381_v6  ;;  %v384_v10 = vld [vmem:[#allocation5 + $0x78] sm:$0xff]  ;;  %v563_v12 = vld [vmem:[#allocation5 + $0x100] sm:$0xff]  ;;  %v565_v19 = vld [vmem:[#allocation5 + $0x110] sm:$0xff] }
  0x78   : > { %2387 = vmatpush3.bf16.msra.mxu0 %v2384_v17  ;;  %v2432_v11 = vpack.c.bf16 %v384_v10, %v383_v9  ;;  %v580_v17 = vrot.slane %v3202_v16, 2  ;;  %v566_v20 = vld [vmem:[#allocation5 + $0x118] sm:$0xff]  ;;  %v568_v24 = vld [vmem:[#allocation5 + $0x128] sm:$0xff]  ;;  %v569_v26 = vld [vmem:[#allocation5 + $0x130] sm:$0xff] }
  0x79   : > { %2389 = vmatprep.subr.bf16.mxu0 %v2388_v23  ;;  %2479 = vmatpush3.bf16.msra.mxu1 %v2476_v40  ;;  %v2440_v21 = vpack.c.bf16 %v566_v20, %v565_v19  ;;  %v570_v16 = vld [vmem:[#allocation5 + $0x138] sm:$0xff]  ;;  %v571_v28 = vld [vmem:[#allocation5 + $0x140] sm:$0xff]  ;;  %v572_v29 = vld [vmem:[#allocation5 + $0x148] sm:$0xff]  ;;  %v584_v40 = vsel %vm579_vm3, %v581_v18, %v583_v39 }
  0x7a   : > { %2481 = vmatprep.subr.bf16.mxu1 %v2480_v47  ;;  %v582_v22 = vsel %vm579_vm3, %v580_v17, %v581_v18  ;;  %v2452_v30 = vpack.c.bf16 %v572_v29, %v571_v28  ;;  %v573_v31 = vld [vmem:[#allocation5 + $0x150] sm:$0xff]  ;;  %v574_v32 = vld [vmem:[#allocation5 + $0x158] sm:$0xff]  ;;  %v576_v34 = vld [vmem:[#allocation5 + $0x168] sm:$0xff] }
  0x7b   : > { %v2456_v33 = vpack.c.bf16 %v574_v32, %v573_v31  ;;  %v577_v36 = vld [vmem:[#allocation5 + $0x170] sm:$0xff]  ;;  %v712_v42 = vld [vmem:[#allocation5 + $0x258] sm:$0xff]  ;;  %v713_v45 = vld [vmem:[#allocation5 + $0x260] sm:$0xff] }
  0x7c   : > { %2391 = vmatpush3.bf16.msra.mxu0 %v2388_v23  ;;  %v567_v23 = vld [vmem:[#allocation5 + $0x120] sm:$0xff]  ;;  %v711_v41 = vld [vmem:[#allocation5 + $0x250] sm:$0xff]  ;;  %v714_v46 = vld [vmem:[#allocation5 + $0x268] sm:$0xff] }
  0x7d   : > { %2393 = vmatprep.subr.bf16.mxu0 %v2392_v27  ;;  %2483 = vmatpush3.bf16.msra.mxu1 %v2480_v47  ;;  %v2444_v25 = vpack.c.bf16 %v568_v24, %v567_v23  ;;  %v2492_v47 = vpack.c.bf16 %v714_v46, %v713_v45  ;;  %v715_v48 = vld [vmem:[#allocation5 + $0x270] sm:$0xff]  ;;  %v716_v49 = vld [vmem:[#allocation5 + $0x278] sm:$0xff]  ;;  %v684_v44 = vld [vmem:[#allocation5 + $0x180] sm:$0xff] }
  0x7e   : > { %2485 = vmatprep.subr.bf16.mxu1 %v2484_v54  ;;  %v2496_v50 = vpack.c.bf16 %v716_v49, %v715_v48  ;;  %v1013_v53 = vld [vmem:[#allocation7 + $0x80] sm:$0xff]  ;;  %v1015_v58 = vld [vmem:[#allocation7 + $0x90] sm:$0xff]  ;;  %v1016_v59 = vld [vmem:[#allocation7 + $0x98] sm:$0xff] }
  0x7f   : > { %v1017_v61 = vld [vmem:[#allocation7 + $0xa0] sm:$0xff]  ;;  %v1018_v62 = vld [vmem:[#allocation7 + $0xa8] sm:$0xff]  ;;  %v1019_v0 = vld [vmem:[#allocation7 + $0xb0] sm:$0xff] }
  0x80   : > { %2395 = vmatpush3.bf16.msra.mxu0 %v2392_v27  ;;  %v2448_v27 = vpack.c.bf16 %v570_v16, %v569_v26  ;;  %v1020_v1 = vld [vmem:[#allocation7 + $0xb8] sm:$0xff]  ;;  %v1021_v3 = vld [vmem:[#allocation7 + $0xc0] sm:$0xff]  ;;  %v1022_v4 = vld [vmem:[#allocation7 + $0xc8] sm:$0xff]  ;;  %v2955_v26 = vmov 0.0  }
  0x81   : > { %2397 = vmatprep.subr.bf16.mxu0 %v2396_v37  ;;  %2487 = vmatpush3.bf16.msra.mxu1 %v2484_v54  ;;  %v1014_v54 = vld [vmem:[#allocation7 + $0x88] sm:$0xff]  ;;  %v1023_v6 = vld [vmem:[#allocation7 + $0xd0] sm:$0xff]  ;;  %v1024_v7 = vld [vmem:[#allocation7 + $0xd8] sm:$0xff] }
  0x82   : > { %v1025_v9 = vld [vmem:[#allocation7 + $0xe0] sm:$0xff]  ;;  %v1026_v10 = vld [vmem:[#allocation7 + $0xe8] sm:$0xff]  ;;  %v1179_v28 = vld [vmem:[#allocation7 + $0x118] sm:$0xff] }
  0x83   : > { %v1176_v23 = vld [vmem:[#allocation7 + $0x100] sm:$0xff]  ;;  %v1177_v24 = vld [vmem:[#allocation7 + $0x108] sm:$0xff]  ;;  %v1187_v39 = vld [vmem:[#allocation7 + $0x158] sm:$0xff] }
  0x84   : > { %2399 = vmatpush3.bf16.msra.mxu0 %v2396_v37  ;;  %v578_v37 = vld [vmem:[#allocation5 + $0x178] sm:$0xff]  ;;  %v1181_v31 = vld [vmem:[#allocation7 + $0x128] sm:$0xff]  ;;  %v1190_v45 = vld [vmem:[#allocation7 + $0x170] sm:$0xff] }
  0x85   : > { %2401 = vmatprep.subr.bf16.mxu0 %v2400_v43  ;;  %v2464_v38 = vpack.c.bf16 %v578_v37, %v577_v36  ;;  %v1185_v36 = vld [vmem:[#allocation7 + $0x148] sm:$0xff]  ;;  %v1191_v46 = vld [vmem:[#allocation7 + $0x178] sm:$0xff] }
  0x88   : > { %2403 = vmatpush3.bf16.msra.mxu0 %v2400_v43  ;;  %v2488_v43 = vpack.c.bf16 %v712_v42, %v711_v41  ;;  %v1188_v41 = vld [vmem:[#allocation7 + $0x160] sm:$0xff]  ;;  %v1189_v42 = vld [vmem:[#allocation7 + $0x168] sm:$0xff] }
  0x89   : > { %2405 = vmatprep.subr.bf16.mxu0 %v2404_v51 }
  0x8a   : > { %2489 = vmatprep.subr.bf16.mxu1 %v2488_v43 }
  0x8b   : > { %1985 = vmatmul.mubr.f32.vlgmr.msra.gmra.mrb[0].mxu0 %v409_v55  ;;  %2491 = vmatpush3.bf16.msra.mxu1 %v2488_v43  ;;  %v2565_v55 = vpack.c.bf16 %v1014_v54, %v1013_v53  ;;  %v2631_v43 = vpack.c.bf16 %v1189_v42, %v1188_v41  ;;  %v882_v41 = vld [vmem:[#allocation5 + $0x2a8] sm:$0xff] }
  0x8c   : > { %2407 = vmatpush3.bf16.msra.mxu0 %v2404_v51  ;;  %2019 = vmatprep.mubr.msk.f32.mxu0 %vm3213_vm2, %v3194_v13  ;;  %v564_v13 = vld [vmem:[#allocation5 + $0x108] sm:$0xff] }
  0x8d   : > { %2409 = vmatprep.subr.bf16.mxu0 %v2408_v56  ;;  %v2436_v14 = vpack.c.bf16 %v564_v13, %v563_v12  ;;  %2493 = vmatprep.subr.bf16.mxu1 %v2492_v47  ;;  %v685_v51 = vld [vmem:[#allocation5 + $0x188] sm:$0xff]  ;;  %v1027_v12 = vld [vmem:[#allocation7 + $0xf0] sm:$0xff]  ;;  %v1028_v13 = vld [vmem:[#allocation7 + $0xf8] sm:$0xff] }
  0x8e   : > { %v3226_v52 = vpack.c.bf16 %v685_v51, %v684_v44  ;;  %v2586_v17 = vpack.c.bf16 %v1028_v13, %v1027_v12  ;;  %v1726_v44 = vld [vmem:[%s3404_s3] ss:$0 sm:$0xff] }
  0x8f   : > { %2495 = vmatpush3.bf16.msra.mxu1 %v2492_v47  ;;  %v2634_v47 = vpack.c.bf16 %v1191_v46, %v1190_v45  ;;  %v884_v45 = vld [vmem:[#allocation5 + $0x2b8] sm:$0xff] }
  0x90   : > { %2411 = vmatpush3.bf16.msra.mxu0 %v2408_v56  ;;  %2497 = vmatprep.subr.bf16.mxu1 %v2496_v50  ;;  %v2953_v56 = vmov 0.0|0.0  }
  0x91   : > { %2413 = vmatprep.subr.bf16.mxu0 %v2412_v60 }
  0x93   : > { %2499 = vmatpush3.bf16.msra.mxu1 %v2496_v50 }
  0x94   : > { %2415 = vmatpush3.bf16.msra.mxu0 %v2412_v60  ;;  %2501 = vmatprep.subr.bf16.mxu1 %v3226_v52  ;;  %v2568_v60 = vpack.c.bf16 %v1016_v59, %v1015_v58 }
  0x95   : > { %2417 = vmatprep.subr.bf16.mxu0 %v2416_v63 }
  0x98   : > { %2419 = vmatpush3.bf16.msra.mxu0 %v2416_v63  ;;  %v2571_v63 = vpack.c.bf16 %v1018_v62, %v1017_v61 }
  0x99   : > { %2421 = vmatprep.subr.bf16.mxu0 %v2420_v2 }
  0x9c   : > { %2423 = vmatpush3.bf16.msra.mxu0 %v2420_v2  ;;  %v2574_v2 = vpack.c.bf16 %v1020_v1, %v1019_v0  ;;  %v687_v0 = vld [vmem:[#allocation5 + $0x198] sm:$0xff] }
  0x9d   : > { %2425 = vmatprep.subr.bf16.mxu0 %v2424_v5 }
  0xa0   : > { %2427 = vmatpush3.bf16.msra.mxu0 %v2424_v5  ;;  %v2577_v5 = vpack.c.bf16 %v1022_v4, %v1021_v3 }
  0xa1   : > { %2429 = vmatprep.subr.bf16.mxu0 %v2428_v8 }
  0xa4   : > { %2431 = vmatpush3.bf16.msra.mxu0 %v2428_v8  ;;  %v2580_v8 = vpack.c.bf16 %v1024_v7, %v1023_v6 }
  0xa5   : > { %2433 = vmatprep.subr.bf16.mxu0 %v2432_v11 }
  0xa8   : > { %2435 = vmatpush3.bf16.msra.mxu0 %v2432_v11  ;;  %v2583_v11 = vpack.c.bf16 %v1026_v10, %v1025_v9 }
  0xa9   : > { %2437 = vmatprep.subr.bf16.mxu0 %v2436_v14 }
  0xab   : > { %2020 = vmatmul.mubr.f32.vlgmr.msra.gmra.mrb[0].mxu0 %v3198_v15  ;;  %v575_v15 = vld [vmem:[#allocation5 + $0x160] sm:$0xff] }
  0xac   : > { %2439 = vmatpush3.bf16.msra.mxu0 %v2436_v14  ;;  %2054 = vmatprep.mubr.f32.mxu0 %v582_v22  ;;  %v2460_v35 = vpack.c.bf16 %v576_v34, %v575_v15  ;;  %v3245_v14 = vld [vmem:[%s350_s10] sm:$0xff]  ;;  %v1183_v15 = vld [vmem:[#allocation7 + $0x138] sm:$0xff] }
  0xad   : > { %2441 = vmatprep.subr.bf16.mxu0 %v2440_v21  ;;  %v3248_v18 = vrot.slane %v3245_v14, 7 }
  0xaf   : > { %v994_v19 = vsel %vm360_vm0, 0.0, %v3248_v18  ;;  %v995_v20 = vsel %vm360_vm0, %v3248_v18, 0.0 }
  0xb0   : > { %2443 = vmatpush3.bf16.msra.mxu0 %v2440_v21  ;;  %v1031_v21 = vrot.slane %v994_v19, 1  ;;  %v1032_v22 = vrot.slane %v995_v20, 1  ;;  %v1192_v48 = vrot.slane %v994_v19, 2  ;;  %v1193_v49 = vrot.slane %v995_v20, 2  ;;  %v689_v19 = vld [vmem:[#allocation5 + $0x1a8] sm:$0xff] }
  0xb1   : > { %2445 = vmatprep.subr.bf16.mxu0 %v2444_v25 }
  0xb2   : > { %v1033_v16 = vsel %vm404_vm1, %v1031_v21, %v1032_v22  ;;  %v1194_v50 = vsel %vm579_vm3, %v1192_v48, %v1193_v49  ;;  %v690_v21 = vld [vmem:[#allocation5 + $0x1b0] sm:$0xff]  ;;  %v691_v22 = vld [vmem:[#allocation5 + $0x1b8] sm:$0xff]  ;;  %v886_v48 = vld [vmem:[#allocation5 + $0x2c8] sm:$0xff] }
  0xb4   : > { %2447 = vmatpush3.bf16.msra.mxu0 %v2444_v25  ;;  %v2613_v25 = vpack.c.bf16 %v1177_v24, %v1176_v23  ;;  %v2512_v23 = vpack.c.bf16 %v691_v22, %v690_v21  ;;  %v692_v24 = vld [vmem:[#allocation5 + $0x1c0] sm:$0xff]  ;;  %v1010_v22 = vld [vmem:[#allocation7 + $0x70] sm:$0xff] }
  0xb5   : > { %2449 = vmatprep.subr.bf16.mxu0 %v2448_v27 }
  0xb8   : > { %2451 = vmatpush3.bf16.msra.mxu0 %v2448_v27  ;;  %v1178_v27 = vld [vmem:[#allocation7 + $0x110] sm:$0xff] }
  0xb9   : > { %2453 = vmatprep.subr.bf16.mxu0 %v2452_v30  ;;  %v2616_v29 = vpack.c.bf16 %v1179_v28, %v1178_v27  ;;  %v694_v27 = vld [vmem:[#allocation5 + $0x1d0] sm:$0xff]  ;;  %v695_v28 = vld [vmem:[#allocation5 + $0x1d8] sm:$0xff] }
  0xbc   : > { %2455 = vmatpush3.bf16.msra.mxu0 %v2452_v30  ;;  %v1180_v30 = vld [vmem:[#allocation7 + $0x120] sm:$0xff] }
  0xbd   : > { %2457 = vmatprep.subr.bf16.mxu0 %v2456_v33  ;;  %v2619_v32 = vpack.c.bf16 %v1181_v31, %v1180_v30  ;;  %v697_v30 = vld [vmem:[#allocation5 + $0x1e8] sm:$0xff] }
  0xc0   : > { %2459 = vmatpush3.bf16.msra.mxu0 %v2456_v33  ;;  %v1182_v33 = vld [vmem:[#allocation7 + $0x130] sm:$0xff] }
  0xc1   : > { %2461 = vmatprep.subr.bf16.mxu0 %v2460_v35  ;;  %v2622_v34 = vpack.c.bf16 %v1183_v15, %v1182_v33  ;;  %v699_v33 = vld [vmem:[#allocation5 + $0x1f8] sm:$0xff] }
  0xc4   : > { %2463 = vmatpush3.bf16.msra.mxu0 %v2460_v35  ;;  %v1184_v35 = vld [vmem:[#allocation7 + $0x140] sm:$0xff] }
  0xc5   : > { %2465 = vmatprep.subr.bf16.mxu0 %v2464_v38  ;;  %v2625_v37 = vpack.c.bf16 %v1185_v36, %v1184_v35  ;;  %v878_v35 = vld [vmem:[#allocation5 + $0x288] sm:$0xff] }
  0xc8   : > { %2467 = vmatpush3.bf16.msra.mxu0 %v2464_v38  ;;  %v1186_v38 = vld [vmem:[#allocation7 + $0x150] sm:$0xff] }
  0xc9   : > { %2564 = vmatprep.subr.bf16.mxu0 %v2953_v56 }
  0xcb   : > { %2055 = vmatmul.mubr.f32.vlgmr.msra.gmra.mrb[0].mxu0 %v584_v40  ;;  %v2628_v40 = vpack.c.bf16 %v1187_v39, %v1186_v38  ;;  %v880_v38 = vld [vmem:[#allocation5 + $0x298] sm:$0xff] }
  0xcc   : > { %2566 = vmatpush3.bf16.msra.mxu0 %v2565_v55  ;;  %2194 = vmatprep.mubr.msk.f32.mxu0 %vm2954_vm4, %v2955_v26 }
  0xcd   : > { %2567 = vmatprep.subr.bf16.mxu0 %v2953_v56 }
  0xd0   : > { %2569 = vmatpush3.bf16.msra.mxu0 %v2568_v60 }
  0xd1   : > { %2570 = vmatprep.subr.bf16.mxu0 %v2953_v56 }
  0xd4   : > { %2572 = vmatpush3.bf16.msra.mxu0 %v2571_v63  ;;  %v686_v63 = vld [vmem:[#allocation5 + $0x190] sm:$0xff] }
  0xd5   : > { %2573 = vmatprep.subr.bf16.mxu0 %v2953_v56  ;;  %v2504_v9 = vpack.c.bf16 %v687_v0, %v686_v63  ;;  %v998_v0 = vld [vmem:[#allocation7 + $0x10] sm:$0xff] }
  0xd8   : > { %2575 = vmatpush3.bf16.msra.mxu0 %v2574_v2 }
  0xd9   : > { %2576 = vmatprep.subr.bf16.mxu0 %v2953_v56 }
  0xdc   : > { %2578 = vmatpush3.bf16.msra.mxu0 %v2577_v5 }
  0xdd   : > { %2579 = vmatprep.subr.bf16.mxu0 %v2953_v56 }
  0xe0   : > { %2581 = vmatpush3.bf16.msra.mxu0 %v2580_v8 }
  0xe1   : > { %2582 = vmatprep.subr.bf16.mxu0 %v2953_v56 }
  0xe4   : > { %2584 = vmatpush3.bf16.msra.mxu0 %v2583_v11 }
  0xe5   : > { %2585 = vmatprep.subr.bf16.mxu0 %v2953_v56 }
  0xe8   : > { %2587 = vmatpush3.bf16.msra.mxu0 %v2586_v17  ;;  %v688_v17 = vld [vmem:[#allocation5 + $0x1a0] sm:$0xff] }
  0xe9   : > { %2612 = vmatprep.subr.bf16.mxu0 %v2953_v56  ;;  %v2508_v20 = vpack.c.bf16 %v689_v19, %v688_v17  ;;  %v1008_v19 = vld [vmem:[#allocation7 + $0x60] sm:$0xff] }
  0xeb   : > { %2195 = vmatmul.mubr.f32.vlgmr.msra.gmra.mrb[2].mxu0 %v1033_v16 }
  0xec   : > { %2614 = vmatpush3.bf16.msra.mxu0 %v2613_v25  ;;  %2264 = vmatprep.mubr.msk.f32.mxu0 %vm2954_vm4, %v2955_v26  ;;  %v693_v25 = vld [vmem:[#allocation5 + $0x1c8] sm:$0xff] }
  0xed   : > { %2615 = vmatprep.subr.bf16.mxu0 %v2953_v56  ;;  %v2516_v16 = vpack.c.bf16 %v693_v25, %v692_v24 }
  0xf0   : > { %2617 = vmatpush3.bf16.msra.mxu0 %v2616_v29  ;;  %v696_v29 = vld [vmem:[#allocation5 + $0x1e0] sm:$0xff] }
  0xf1   : > { %2618 = vmatprep.subr.bf16.mxu0 %v2953_v56  ;;  %v2524_v31 = vpack.c.bf16 %v697_v30, %v696_v29  ;;  %v1298_v30 = vld [vmem:[#allocation7 + $0x208] sm:$0xff] }
  0xf4   : > { %2620 = vmatpush3.bf16.msra.mxu0 %v2619_v32  ;;  %v698_v32 = vld [vmem:[#allocation5 + $0x1f0] sm:$0xff] }
  0xf5   : > { %2621 = vmatprep.subr.bf16.mxu0 %v2953_v56  ;;  %v2528_v15 = vpack.c.bf16 %v699_v33, %v698_v32  ;;  %v1283_v32 = vld [vmem:[#allocation7 + $0x198] sm:$0xff] }
  0xf8   : > { %2623 = vmatpush3.bf16.msra.mxu0 %v2622_v34  ;;  %v877_v34 = vld [vmem:[#allocation5 + $0x280] sm:$0xff] }
  0xf9   : > { %2624 = vmatprep.subr.bf16.mxu0 %v2953_v56  ;;  %v2532_v36 = vpack.c.bf16 %v878_v35, %v877_v34  ;;  %v1300_v34 = vld [vmem:[#allocation7 + $0x218] sm:$0xff] }
  0xfc   : > { %2626 = vmatpush3.bf16.msra.mxu0 %v2625_v37  ;;  %v879_v37 = vld [vmem:[#allocation5 + $0x290] sm:$0xff] }
  0xfd   : > { %2627 = vmatprep.subr.bf16.mxu0 %v2953_v56  ;;  %v2536_v39 = vpack.c.bf16 %v880_v38, %v879_v37  ;;  %v1285_v37 = vld [vmem:[#allocation7 + $0x1a8] sm:$0xff]  ;;  %v1301_v38 = vld [vmem:[#allocation7 + $0x220] sm:$0xff] }
 0x100   : > { %2629 = vmatpush3.bf16.msra.mxu0 %v2628_v40  ;;  %v881_v40 = vld [vmem:[#allocation5 + $0x2a0] sm:$0xff] }
 0x101   : > { %2630 = vmatprep.subr.bf16.mxu0 %v2953_v56  ;;  %v2540_v42 = vpack.c.bf16 %v882_v41, %v881_v40 }
 0x104   : > { %2632 = vmatpush3.bf16.msra.mxu0 %v2631_v43  ;;  %v883_v43 = vld [vmem:[#allocation5 + $0x2b0] sm:$0xff] }
 0x105   : > { %2633 = vmatprep.subr.bf16.mxu0 %v2953_v56  ;;  %v2544_v46 = vpack.c.bf16 %v884_v45, %v883_v43  ;;  %v1287_v43 = vld [vmem:[#allocation7 + $0x1b8] sm:$0xff]  ;;  %v1303_v45 = vld [vmem:[#allocation7 + $0x230] sm:$0xff] }
 0x108   : > { %2635 = vmatpush3.bf16.msra.mxu0 %v2634_v47  ;;  %v885_v47 = vld [vmem:[#allocation5 + $0x2c0] sm:$0xff] }
 0x109   : > { %2660 = vmatprep.subr.bf16.mxu0 %v2953_v56  ;;  %v2548_v49 = vpack.c.bf16 %v886_v48, %v885_v47 }
 0x10b   : > { %2265 = vmatmul.mubr.f32.vlgmr.msra.gmra.mrb[4].mxu0 %v1194_v50  ;;  %v887_v50 = vld [vmem:[#allocation5 + $0x2d0] sm:$0xff] }
 0x10c   : > { %2334 = vmatprep.mubr.msk.f32.mxu0 %vm2954_vm4, %v2955_v26 }
 0x19e   : > { %v2056_v51 = vpop.f32.mrb[0].mxu0 }
 0x19f   : > { %v670_v53 = vadd.f32 %v2056_v51, %v1726_v44  ;;  %v653_v54 = vpop.f32.mrb[1].mxu0 }
 0x1a0   : > { %v669_v55 = vadd.f32 %v1726_v44, %v653_v54  ;;  %v888_v44 = vld [vmem:[#allocation5 + $0x2d8] sm:$0xff]  ;;  %v890_v54 = vld [vmem:[#allocation5 + $0x2e8] sm:$0xff] }
 0x1a1   : > { %v672_v58 = vmax.f32 %v670_v53, 0.0  ;;  %v2552_v51 = vpack.c.bf16 %v888_v44, %v887_v50  ;;  %v889_v53 = vld [vmem:[#allocation5 + $0x2e0] sm:$0xff]  ;;  %v1289_v50 = vld [vmem:[#allocation7 + $0x1c8] sm:$0xff] }
 0x1a2   : > { %v671_v59 = vmax.f32 %v669_v55, 0.0  ;;  %v2556_v55 = vpack.c.bf16 %v890_v54, %v889_v53  ;;  %v1305_v44 = vld [vmem:[#allocation7 + $0x240] sm:$0xff] }
 0x1a3   : > { %v676_v60 = vrot.slane %v672_v58, 7  ;;  %v891_v58 = vld [vmem:[#allocation5 + $0x2f0] sm:$0xff] }
 0x1a4   : > { %v675_v61 = vrot.slane %v671_v59, 7  ;;  %v892_v59 = vld [vmem:[#allocation5 + $0x2f8] sm:$0xff] }
 0x1a5   : > { %v682_v62 = vsel %vm360_vm0, %v676_v60, 0.0 }
 0x1a6   : > { %v722_v1 = vrot.slane %v682_v62, 1  ;;  %v896_v2 = vrot.slane %v682_v62, 2  ;;  %v677_v3 = vsel %vm360_vm0, %v675_v61, %v676_v60  ;;  %v681_v4 = vsel %vm360_vm0, 0.0, %v675_v61  ;;  %v997_v62 = vld [vmem:[#allocation7 + $0x8] sm:$0xff] }
 0x1a7   : > { %v719_v5 = vrot.slane %v681_v4, 1  ;;  %v720_v6 = vrot.slane %v677_v3, 1  ;;  %v893_v7 = vrot.slane %v681_v4, 2  ;;  %v894_v8 = vrot.slane %v677_v3, 2  ;;  %v1001_v4 = vld [vmem:[#allocation7 + $0x28] sm:$0xff] }
 0x1a8   : > { %v2560_v60 = vpack.c.bf16 %v892_v59, %v891_v58  ;;  %v1291_v58 = vld [vmem:[#allocation7 + $0x1d8] sm:$0xff] }
 0x1a9   : > { %v721_v10 = vsel %vm404_vm1, %v719_v5, %v720_v6  ;;  %v723_v11 = vsel %vm404_vm1, %v720_v6, %v722_v1  ;;  %v895_v12 = vsel %vm579_vm3, %v893_v7, %v894_v8  ;;  %v3281_v13 = vsel %vm579_vm3, %v894_v8, %v896_v2  ;;  %v999_v1 = vld [vmem:[#allocation7 + $0x18] sm:$0xff]  ;;  %v1002_v6 = vld [vmem:[#allocation7 + $0x30] sm:$0xff] }
 0x1aa   : > { %2089 = vmatprep.mubr.f32.mxu1 %v721_v10  ;;  %v2592_v2 = vpack.c.bf16 %v999_v1, %v998_v0  ;;  %v1003_v7 = vld [vmem:[#allocation7 + $0x38] sm:$0xff]  ;;  %v1005_v10 = vld [vmem:[#allocation7 + $0x48] sm:$0xff] }
 0x1ab   : > { %2090 = vmatmul.mubr.f32.vlgmr.msra.gmra.mrb[0].mxu1 %v723_v11  ;;  %v2598_v8 = vpack.c.bf16 %v1003_v7, %v1002_v6  ;;  %v1293_v0 = vld [vmem:[#allocation7 + $0x1e8] sm:$0xff]  ;;  %v1294_v7 = vld [vmem:[#allocation7 + $0x1f0] sm:$0xff] }
 0x1ac   : > { %2503 = vmatpush3.bf16.msra.mxu1 %v3226_v52  ;;  %2124 = vmatprep.mubr.msk.f32.mxu1 %vm3213_vm2, %v675_v61  ;;  %v2520_v52 = vpack.c.bf16 %v695_v28, %v694_v27  ;;  %v996_v61 = vld [vmem:[#allocation7] sm:$0xff]  ;;  %v1281_v28 = vld [vmem:[#allocation7 + $0x188] sm:$0xff] }
 0x1ad   : > { %2505 = vmatprep.subr.bf16.mxu1 %v2504_v9  ;;  %v2589_v63 = vpack.c.bf16 %v997_v62, %v996_v61  ;;  %v1280_v27 = vld [vmem:[#allocation7 + $0x180] sm:$0xff]  ;;  %v1308_v61 = vld [vmem:[#allocation7 + $0x258] sm:$0xff] }
 0x1ae   : > { %v2661_v29 = vpack.c.bf16 %v1281_v28, %v1280_v27 }
 0x1b0   : > { %2507 = vmatpush3.bf16.msra.mxu1 %v2504_v9  ;;  %v1004_v9 = vld [vmem:[#allocation7 + $0x40] sm:$0xff]  ;;  %2662 = vmatpush3.bf16.msra.mxu0 %v2661_v29 }
 0x1b1   : > { %2509 = vmatprep.subr.bf16.mxu1 %v2508_v20  ;;  %v2601_v11 = vpack.c.bf16 %v1005_v10, %v1004_v9  ;;  %2663 = vmatprep.subr.bf16.mxu0 %v2953_v56  ;;  %v1311_v10 = vld [vmem:[#allocation7 + $0x270] sm:$0xff] }
 0x1b4   : > { %2511 = vmatpush3.bf16.msra.mxu1 %v2508_v20  ;;  %v1009_v20 = vld [vmem:[#allocation7 + $0x68] sm:$0xff] }
 0x1b5   : > { %2513 = vmatprep.subr.bf16.mxu1 %v2512_v23  ;;  %v2607_v21 = vpack.c.bf16 %v1009_v20, %v1008_v19 }
 0x1b8   : > { %2515 = vmatpush3.bf16.msra.mxu1 %v2512_v23  ;;  %v1011_v23 = vld [vmem:[#allocation7 + $0x78] sm:$0xff] }
 0x1b9   : > { %2517 = vmatprep.subr.bf16.mxu1 %v2516_v16  ;;  %v2610_v24 = vpack.c.bf16 %v1011_v23, %v1010_v22  ;;  %v2788_v22 = vld [vmem:[%s3182_s19 + $0x8] sm:$0xff] }
 0x1bc   : > { %2519 = vmatpush3.bf16.msra.mxu1 %v2516_v16 }
 0x1bd   : > { %2521 = vmatprep.subr.bf16.mxu1 %v2520_v52 }
 0x1be   : > { %v3303_v25 = vpop.f32.mrb[2].mxu0 }
 0x1bf   : > { %v2196_v16 = vpop.f32.mrb[3].mxu0 }
 0x1c0   : > { %2523 = vmatpush3.bf16.msra.mxu1 %v2520_v52  ;;  %v1297_v52 = vld [vmem:[#allocation7 + $0x200] sm:$0xff] }
 0x1c1   : > { %2525 = vmatprep.subr.bf16.mxu1 %v2524_v31  ;;  %v2637_v33 = vpack.c.bf16 %v1298_v30, %v1297_v52 }
 0x1c4   : > { %2527 = vmatpush3.bf16.msra.mxu1 %v2524_v31  ;;  %v1282_v31 = vld [vmem:[#allocation7 + $0x190] sm:$0xff] }
 0x1c5   : > { %2529 = vmatprep.subr.bf16.mxu1 %v2528_v15  ;;  %v2664_v35 = vpack.c.bf16 %v1283_v32, %v1282_v31  ;;  %v1732_v31 = vld [vmem:[%s3406_s5] ss:$0 sm:$0xff] }
 0x1c7   : > { %2665 = vmatpush3.bf16.msra.mxu0 %v2664_v35  ;;  %v1460_v35 = vld [vmem:[#allocation7 + $0x280] sm:$0xff] }
 0x1c8   : > { %2531 = vmatpush3.bf16.msra.mxu1 %v2528_v15  ;;  %v1299_v15 = vld [vmem:[#allocation7 + $0x210] sm:$0xff]  ;;  %2666 = vmatprep.subr.bf16.mxu0 %v2953_v56 }
 0x1c9   : > { %2533 = vmatprep.subr.bf16.mxu1 %v2532_v36 }
 0x1cb   : > { %2125 = vmatmul.mubr.f32.vlgmr.msra.gmra.mrb[0].mxu1 %v677_v3  ;;  %v1000_v3 = vld [vmem:[#allocation7 + $0x20] sm:$0xff] }
 0x1cc   : > { %2535 = vmatpush3.bf16.msra.mxu1 %v2532_v36  ;;  %2159 = vmatprep.mubr.f32.mxu1 %v895_v12  ;;  %v2595_v5 = vpack.c.bf16 %v1001_v4, %v1000_v3  ;;  %v1006_v12 = vld [vmem:[#allocation7 + $0x50] sm:$0xff]  ;;  %v1284_v36 = vld [vmem:[#allocation7 + $0x1a0] sm:$0xff] }
 0x1cd   : > { %2537 = vmatprep.subr.bf16.mxu1 %v2536_v39  ;;  %v2667_v40 = vpack.c.bf16 %v1285_v37, %v1284_v36  ;;  %v1309_v4 = vld [vmem:[#allocation7 + $0x260] sm:$0xff] }
 0x1cf   : > { %2668 = vmatpush3.bf16.msra.mxu0 %v2667_v40  ;;  %v1462_v40 = vld [vmem:[#allocation7 + $0x290] sm:$0xff] }
 0x1d0   : > { %2539 = vmatpush3.bf16.msra.mxu1 %v2536_v39  ;;  %v1302_v39 = vld [vmem:[#allocation7 + $0x228] sm:$0xff]  ;;  %2669 = vmatprep.subr.bf16.mxu0 %v2953_v56 }
 0x1d1   : > { %2541 = vmatprep.subr.bf16.mxu1 %v2540_v42  ;;  %v2643_v41 = vpack.c.bf16 %v1302_v39, %v1301_v38 }
 0x1d4   : > { %2543 = vmatpush3.bf16.msra.mxu1 %v2540_v42  ;;  %v1286_v42 = vld [vmem:[#allocation7 + $0x1b0] sm:$0xff] }
 0x1d5   : > { %2545 = vmatprep.subr.bf16.mxu1 %v2544_v46  ;;  %v2670_v47 = vpack.c.bf16 %v1287_v43, %v1286_v42 }
 0x1d7   : > { %2671 = vmatpush3.bf16.msra.mxu0 %v2670_v47  ;;  %v1466_v47 = vld [vmem:[#allocation7 + $0x2b0] sm:$0xff] }
 0x1d8   : > { %2547 = vmatpush3.bf16.msra.mxu1 %v2544_v46  ;;  %v1304_v46 = vld [vmem:[#allocation7 + $0x238] sm:$0xff]  ;;  %2672 = vmatprep.subr.bf16.mxu0 %v2953_v56 }
 0x1d9   : > { %2549 = vmatprep.subr.bf16.mxu1 %v2548_v49  ;;  %v2646_v48 = vpack.c.bf16 %v1304_v46, %v1303_v45  ;;  %v1464_v45 = vld [vmem:[#allocation7 + $0x2a0] sm:$0xff]  ;;  %v1465_v46 = vld [vmem:[#allocation7 + $0x2a8] sm:$0xff] }
 0x1da   : > { %v2691_v57 = vpack.c.bf16 %v1465_v46, %v1464_v45 }
 0x1dc   : > { %2551 = vmatpush3.bf16.msra.mxu1 %v2548_v49  ;;  %v1288_v49 = vld [vmem:[#allocation7 + $0x1c0] sm:$0xff] }
 0x1dd   : > { %2553 = vmatprep.subr.bf16.mxu1 %v2552_v51  ;;  %v2673_v53 = vpack.c.bf16 %v1289_v50, %v1288_v49  ;;  %v1468_v50 = vld [vmem:[#allocation7 + $0x2c0] sm:$0xff] }
 0x1de   : > { %v1262_v1 = vpop.f32.mrb[4].mxu0 }
 0x1df   : > { %2674 = vmatpush3.bf16.msra.mxu0 %v2673_v53  ;;  %v2266_v3 = vpop.f32.mrb[5].mxu0  ;;  %v1471_v53 = vld [vmem:[#allocation7 + $0x2d8] sm:$0xff] }
 0x1e0   : > { %2555 = vmatpush3.bf16.msra.mxu1 %v2552_v51  ;;  %v1306_v51 = vld [vmem:[#allocation7 + $0x248] sm:$0xff]  ;;  %2675 = vmatprep.subr.bf16.mxu0 %v2953_v56 }
 0x1e1   : > { %2557 = vmatprep.subr.bf16.mxu1 %v2556_v55  ;;  %v2649_v54 = vpack.c.bf16 %v1306_v51, %v1305_v44  ;;  %v1469_v44 = vld [vmem:[#allocation7 + $0x2c8] sm:$0xff] }
 0x1e2   : > { %v2697_v51 = vpack.c.bf16 %v1469_v44, %v1468_v50 }
 0x1e4   : > { %2559 = vmatpush3.bf16.msra.mxu1 %v2556_v55  ;;  %v1290_v55 = vld [vmem:[#allocation7 + $0x1d0] sm:$0xff] }
 0x1e5   : > { %2561 = vmatprep.subr.bf16.mxu1 %v2560_v60  ;;  %v2676_v59 = vpack.c.bf16 %v1291_v58, %v1290_v55  ;;  %v1472_v55 = vld [vmem:[#allocation7 + $0x2e0] sm:$0xff]  ;;  %v1473_v58 = vld [vmem:[#allocation7 + $0x2e8] sm:$0xff] }
 0x1e7   : > { %2677 = vmatpush3.bf16.msra.mxu0 %v2676_v59  ;;  %v2703_v59 = vpack.c.bf16 %v1473_v58, %v1472_v55 }
 0x1e8   : > { %2563 = vmatpush3.bf16.msra.mxu1 %v2560_v60  ;;  %v1307_v60 = vld [vmem:[#allocation7 + $0x250] sm:$0xff]  ;;  %2678 = vmatprep.subr.bf16.mxu0 %v2953_v56 }
 0x1e9   : > { %2588 = vmatprep.subr.bf16.mxu1 %v2953_v56  ;;  %v2652_v62 = vpack.c.bf16 %v1308_v61, %v1307_v60  ;;  %v1474_v60 = vld [vmem:[#allocation7 + $0x2f0] sm:$0xff]  ;;  %v1475_v61 = vld [vmem:[#allocation7 + $0x2f8] sm:$0xff] }
 0x1eb   : > { %2160 = vmatmul.mubr.f32.vlgmr.msra.gmra.mrb[0].mxu1 %v3281_v13  ;;  %v1007_v13 = vld [vmem:[#allocation7 + $0x58] sm:$0xff] }
 0x1ec   : > { %2590 = vmatpush3.bf16.msra.mxu1 %v2589_v63  ;;  %2229 = vmatprep.mubr.msk.f32.mxu1 %vm2954_vm4, %v2955_v26  ;;  %v2604_v17 = vpack.c.bf16 %v1007_v13, %v1006_v12  ;;  %v1292_v63 = vld [vmem:[#allocation7 + $0x1e0] sm:$0xff] }
 0x1ed   : > { %2591 = vmatprep.subr.bf16.mxu1 %v2953_v56  ;;  %v1729_v13 = vld [vmem:[%s3404_s3 + $0x1] ss:$0 sm:$0xff] }
 0x1f0   : > { %2593 = vmatpush3.bf16.msra.mxu1 %v2592_v2  ;;  %v2679_v2 = vpack.c.bf16 %v1293_v0, %v1292_v63 }
 0x1f1   : > { %2594 = vmatprep.subr.bf16.mxu1 %v2953_v56 }
 0x1f2   : > { %2680 = vmatpush3.bf16.msra.mxu0 %v2679_v2 }
 0x1f3   : > { %2681 = vmatprep.subr.bf16.mxu0 %v2953_v56 }
 0x1f4   : > { %2596 = vmatpush3.bf16.msra.mxu1 %v2595_v5  ;;  %v1310_v5 = vld [vmem:[#allocation7 + $0x268] sm:$0xff] }
 0x1f5   : > { %2597 = vmatprep.subr.bf16.mxu1 %v2953_v56  ;;  %v2655_v6 = vpack.c.bf16 %v1310_v5, %v1309_v4 }
 0x1f8   : > { %2599 = vmatpush3.bf16.msra.mxu1 %v2598_v8  ;;  %v1295_v8 = vld [vmem:[#allocation7 + $0x1f8] sm:$0xff] }
 0x1f9   : > { %2600 = vmatprep.subr.bf16.mxu1 %v2953_v56  ;;  %v2682_v9 = vpack.c.bf16 %v1295_v8, %v1294_v7 }
 0x1fb   : > { %2683 = vmatpush3.bf16.msra.mxu0 %v2682_v9 }
 0x1fc   : > { %2602 = vmatpush3.bf16.msra.mxu1 %v2601_v11  ;;  %v1312_v11 = vld [vmem:[#allocation7 + $0x278] sm:$0xff] }
 0x1fd   : > { %2603 = vmatprep.subr.bf16.mxu1 %v2953_v56  ;;  %v2658_v12 = vpack.c.bf16 %v1312_v11, %v1311_v10 }
 0x200   : > { %2605 = vmatpush3.bf16.msra.mxu1 %v2604_v17 }
 0x201   : > { %2606 = vmatprep.subr.bf16.mxu1 %v2953_v56 }
 0x204   : > { %2608 = vmatpush3.bf16.msra.mxu1 %v2607_v21 }
 0x205   : > { %2609 = vmatprep.subr.bf16.mxu1 %v2953_v56 }
 0x208   : > { %2611 = vmatpush3.bf16.msra.mxu1 %v2610_v24  ;;  %v2789_v24 = vld [vmem:[%s3182_s19] sm:$0xff]  ;;  %s1720_s19 = sshll.u32 %s3178_s20, 3 }
 0x209   : > { %2636 = vmatprep.subr.bf16.mxu1 %v2953_v56  ;;  %s346_s15 = scalar_lea.vmem [#allocation8], %s1720_s19 }
 0x20a   : > { %s1582_s14 = sshll.u32 %s346_s15, 4  ;;  %s3359_s14 = int_to_ptr.vmem [resolvable:$true] %s1582_s14 }
 0x20b   : > { %2230 = vmatmul.mubr.msk.f32.vlgmr.msra.gmra.mrb[2].mxu1 %vm3213_vm2, %v3248_v18  ;;  %v2640_v18 = vpack.c.bf16 %v1300_v34, %v1299_v15  ;;  %p2883_p9 = scmp.lt.s32.totalorder %s3359_s14, %s2881_s30 }
 0x20c   : > { %2299 = vmatprep.mubr.msk.f32.mxu1 %vm2954_vm4, %v2955_v26  ;;  %2638 = vmatpush3.bf16.msra.mxu1 %v2637_v33 }
 0x20d   : > { %2639 = vmatprep.subr.bf16.mxu1 %v2953_v56 }
 0x210   : > { %2641 = vmatpush3.bf16.msra.mxu1 %v2640_v18  ;;  %v1461_v18 = vld [vmem:[#allocation7 + $0x288] sm:$0xff] }
 0x211   : > { %2642 = vmatprep.subr.bf16.mxu1 %v2953_v56  ;;  %v2685_v39 = vpack.c.bf16 %v1461_v18, %v1460_v35 }
 0x214   : > { %2644 = vmatpush3.bf16.msra.mxu1 %v2643_v41  ;;  %v1463_v41 = vld [vmem:[#allocation7 + $0x298] sm:$0xff] }
 0x215   : > { %2645 = vmatprep.subr.bf16.mxu1 %v2953_v56  ;;  %v2688_v43 = vpack.c.bf16 %v1463_v41, %v1462_v40 }
 0x218   : > { %2647 = vmatpush3.bf16.msra.mxu1 %v2646_v48  ;;  %v1467_v48 = vld [vmem:[#allocation7 + $0x2b8] sm:$0xff] }
 0x219   : > { %2648 = vmatprep.subr.bf16.mxu1 %v2953_v56  ;;  %v2694_v49 = vpack.c.bf16 %v1467_v48, %v1466_v47 }
 0x21c   : > { %2650 = vmatpush3.bf16.msra.mxu1 %v2649_v54 }
 0x21d   : > { %2651 = vmatprep.subr.bf16.mxu1 %v2953_v56 }
 0x220   : > { %2653 = vmatpush3.bf16.msra.mxu1 %v2652_v62  ;;  %v2706_v62 = vpack.c.bf16 %v1475_v61, %v1474_v60 }
 0x221   : > { %2654 = vmatprep.subr.bf16.mxu1 %v2953_v56 }
 0x224   : > { %2656 = vmatpush3.bf16.msra.mxu1 %v2655_v6 }
 0x225   : > { %2657 = vmatprep.subr.bf16.mxu1 %v2953_v56 }
 0x228   : > { %2659 = vmatpush3.bf16.msra.mxu1 %v2658_v12 }
 0x229   : > { %2684 = vmatprep.subr.bf16.mxu1 %v2953_v56 }
 0x2be   : > { %v2161_v17 = vpop.f32.mrb[0].mxu1 }
 0x2bf   : > { %v983_v19 = vadd.f32 %v2161_v17, %v1729_v13  ;;  %v966_v20 = vpop.f32.mrb[1].mxu1 }
 0x2c0   : > { %v982_v21 = vadd.f32 %v1729_v13, %v966_v20 }
 0x2c1   : > { %v985_v23 = vadd.f32 %v2788_v22, %v983_v19 }
 0x2c2   : > { %v984_v16 = vadd.f32 %v2789_v24, %v982_v21 }
 0x2c3   : > { %v987_v27 = vmax.f32 %v985_v23, 0.0 }
 0x2c4   : > { %v986_v28 = vmax.f32 %v984_v16, 0.0 }
 0x2c5   : > { %989 = vst [vmem:[%s355_s9 + $0x8] sm:$0xff] %v987_v27 }
 0x2c6   : > { %988 = vst [vmem:[%s355_s9] sm:$0xff] %v986_v28  ;;  %s2876_s9 = scalar_lea.vmem %s3359_s14, 128 }
 0x2c7   : > { %p2877_p0 = scmp.ne.s32.totalorder %s3359_s14, %s2876_s9  ;;  %p2884_p12 = scmp.lt.s32.totalorder %s2882_s29, %s2876_s9 }
 0x2c9   : > { %p2878_p3 = pnand %p2877_p0, %p3426_p2  ;;  %p2885_p1 = por %p2884_p12, %p2883_p9 }
 0x2cb   : > { %p2879_p7 = pneg %p2878_p3 }
 0x2cd   : > { %p2886_p13 = pnand %p2885_p1, %p2879_p7 }
 0x2de   : > { %v1171_v52 = vpop.f32.mrb[2].mxu1 }
 0x2df   : > { %v1172_v29 = vadd.f32 %v1171_v52, %v3303_v25  ;;  %v2231_v30 = vpop.f32.mrb[3].mxu1 }
 0x2e1   : > { %v1266_v32 = vadd.f32 %v1262_v1, %v1172_v29 }
 0x2e3   : > { %v1272_v33 = vadd.f32 %v1732_v31, %v1266_v32 }
 0x2e5   : > { %v1273_v15 = vmax.f32 %v1272_v33, 0.0 }
 0x2e7   : > { %v1275_v34 = vrot.slane %v1273_v15, 7 }
 0x2e9   : > { %v1277_v36 = vsel %vm360_vm0, 0.0, %v1275_v34  ;;  %v1278_v37 = vsel %vm360_vm0, %v1275_v34, 0.0  ;;  %2335 = vmatmul.mubr.msk.f32.vlgmr.msra.gmra.mrb[6].mxu0 %vm3213_vm2, %v1275_v34 }
 0x2ea   : > { %v1315_v38 = vrot.slane %v1277_v36, 1  ;;  %v1316_v25 = vrot.slane %v1278_v37, 1  ;;  %v1476_v63 = vrot.slane %v1277_v36, 2  ;;  %v1477_v0 = vrot.slane %v1278_v37, 2 }
 0x2ec   : > { %v1317_v42 = vsel %vm404_vm1, %v1315_v38, %v1316_v25  ;;  %v1478_v1 = vsel %vm579_vm3, %v1476_v63, %v1477_v0 }
 0x2ed   : > { %2300 = vmatmul.mubr.f32.vlgmr.msra.gmra.mrb[4].mxu1 %v1317_v42 }
 0x2ee   : > { %2686 = vmatpush3.bf16.msra.mxu1 %v2685_v39  ;;  %2369 = vmatprep.mubr.msk.f32.mxu1 %vm2954_vm4, %v2955_v26  ;;  %v1470_v26 = vld [vmem:[#allocation7 + $0x2d0] sm:$0xff] }
 0x2ef   : > { %2687 = vmatprep.subr.bf16.mxu1 %v2953_v56  ;;  %v2700_v54 = vpack.c.bf16 %v1471_v53, %v1470_v26 }
 0x2f2   : > { %2689 = vmatpush3.bf16.msra.mxu1 %v2688_v43 }
 0x2f3   : > { %2690 = vmatprep.subr.bf16.mxu1 %v2953_v56 }
 0x2f6   : > { %2692 = vmatpush3.bf16.msra.mxu1 %v2691_v57 }
 0x2f7   : > { %2693 = vmatprep.subr.bf16.mxu1 %v2953_v56 }
 0x2fa   : > { %2695 = vmatpush3.bf16.msra.mxu1 %v2694_v49 }
 0x2fb   : > { %2696 = vmatprep.subr.bf16.mxu1 %v2953_v56 }
 0x2fe   : > { %2698 = vmatpush3.bf16.msra.mxu1 %v2697_v51 }
 0x2ff   : > { %2699 = vmatprep.subr.bf16.mxu1 %v2953_v56 }
 0x302   : > { %2701 = vmatpush3.bf16.msra.mxu1 %v2700_v54 }
 0x303   : > { %2702 = vmatprep.subr.bf16.mxu1 %v2953_v56 }
 0x306   : > { %2704 = vmatpush3.bf16.msra.mxu1 %v2703_v59 }
 0x307   : > { %2705 = vmatprep.subr.bf16.mxu1 %v2953_v56  ;;  %v1735_v56 = vld [vmem:[%s3406_s5 + $0x1] ss:$0 sm:$0xff] }
 0x30a   : > { %2707 = vmatpush3.bf16.msra.mxu1 %v2706_v62 }
 0x30d   : > { %2370 = vmatmul.mubr.f32.vlgmr.msra.gmra.mrb[6].mxu1 %v1478_v1 }
 0x3bc   : > { %v1455_v2 = vpop.f32.mrb[6].mxu0 }
 0x3bd   : > { %v2336_v3 = vpop.f32.mrb[7].mxu0 }
 0x3c0   : > { %v1385_v4 = vpop.f32.mrb[4].mxu1 }
 0x3c1   : > { %v1456_v5 = vadd.f32 %v1455_v2, %v1385_v4  ;;  %v2301_v6 = vpop.f32.mrb[5].mxu1 }
 0x3e0   : > { %v1546_v7 = vpop.f32.mrb[6].mxu1 }
 0x3e1   : > { %v1550_v8 = vadd.f32 %v1546_v7, %v1456_v5  ;;  %v2371_v9 = vpop.f32.mrb[7].mxu1 }
 0x3e3   : > { %v1556_v10 = vadd.f32 %v1735_v56, %v1550_v8 }
 0x3e5   : > { %v1557_v11 = vadd.f32 %v1556_v10, %v3245_v14 }
 0x3e7   : > { %v1558_v12 = vmax.f32 %v1557_v11, 0.0 }
 0x3e9   : > { %1559 = vst [vmem:[%s346_s15] sm:$0xff] %v1558_v12 }
 0x3ea   : > { %2889 = shalt.err (!%p2886_p13)
}
 0x3eb   : > { %s2890_s20 = scalar_lea.hbm %s3357_s22, 128  ;;  %s2894_s10 = scalar_lea.hbm %s3408_s7, 256 }
 0x3ec   : > { %p2891_p6 = scmp.ne.s32.totalorder %s3357_s22, %s2890_s20  ;;  %p2895_p5 = scmp.lt.u32.totalorder %s3357_s22, %s3408_s7 }
 0x3ed   : > { %p2896_p8 = scmp.lt.u32.totalorder %s2894_s10, %s2890_s20  ;;  %p2898_p0 = scmp.lt.u32.totalorder %s2890_s20, %s3357_s22 }
 0x3ee   : > { %p2892_p10 = pnand %p2891_p6, %p3426_p2 }
 0x3ef   : > { %p2897_p11 = por %p2896_p8, %p2895_p5 }
 0x3f0   : > { %p2893_p4 = pneg %p2892_p10 }
 0x3f1   : > { %p2899_p3 = por %p2898_p0, %p2897_p11 }
 0x3f3   : > { %p2900_p7 = pnand %p2899_p3, %p2893_p4 }
 0x3f5   : > { %2903 = shalt.err (!%p2900_p7)
}
 0x3f6   : > { %2726 = dma.vmem_to_hbm [thread:$0]  (%p3426_p2), %s3359_s14, 128, %s3357_s22, %s1566_s18  }
 0x3f7 PF: > { %s1602_s21 = sand.u32 1, %s2934_s24   ;;  %p3427_p9 = scmp.ne.s32.totalorder %s3414_s8, 0 }
 0x3f8   : > { %p3428_p12 = scmp.ge.s32.totalorder %s2946_s27, 2  ;;  %s1603_s23 = scalar_lea.sflag [#allocation4], %s1602_s21 }
 0x3fa   : > { %p2740_p1 = pnand %p3428_p12, %p3427_p9 }
 0x3fc   : > { %2929 = dma.done.wait (!%p2740_p1), %s1603_s23, 128  }
 0x3fd   : > { %2931 = vsyncadd (!%p2740_p1), %s1603_s23, 4294967168  ;;  %p22_p13 = scmp.ge.s32.totalorder %s3113_s12, 4   ;;  %s3429_s24 = smov %s2938_s25 }
 0x3fe   : > { %s3430_s25 = smov %s2942_s26  ;;  %s3431_s26 = smov %s3129_s17 }
 0x3ff   : > { %s3432_s27 = smov %s3113_s12  ;;  %24 = sbr.rel (!%p22_p13) target bundleno = 6 (0x6), region = 122 }
 0x406   :  { %1608 = vsyncpa [#allocation3], 1 }
 0x407   :  { %1610 = vsyncpa [#allocation3 + $0x1], 1 }
 0x408   :  { %1611 = vsyncpa [#allocation6], 1 }
 0x409   :  { %1612 = vsyncpa [#allocation4], 1 }
 0x40a   :  { %1614 = vsyncpa [#allocation4 + $0x1], 1 }

</bundles_post_ra>
